<compile_context>
chip_gen: v7x
topology: tpu7x:2x2x1
jax: 0.10.0
libtpu: 0.0.40
codegen_flags: <defaults>
</compile_context>

<pallas_src>
import jax
import jax.numpy as jnp
import numpy as np
from jax.experimental import pallas as pl
from jax.experimental.pallas import tpu as pltpu


def cxcy_to_xy(cxcy):
    return jnp.concatenate(
        [cxcy[:, :2] - cxcy[:, 2:] / 2.0, cxcy[:, :2] + cxcy[:, 2:] / 2.0], axis=1)


# --------------------------------------------------------------------------- #
# Fused kernel: matching + encoding + CE + hard-negative mining + partial sums
# --------------------------------------------------------------------------- #
def make_multibox_kernel(threshold, neg_pos_ratio, tb, n_obj, n_pri, n_cls):
    thr = float(threshold)
    ratio = float(neg_pos_ratio)

    def kernel(priors_ref, ygt_ref, yhatloc_ref, yhatcls_ref, out_ref):
        pr = priors_ref[...]                           # (8, P): rows 0-3 xy, 4-7 cxcywh
        p_xy = pr[None, 0:4, :]                        # (1, 4, P)
        p_cxcy = pr[None, 4:8, :]                      # (1, 4, P)
        p_xmin = p_xy[:, 0:1, :]; p_ymin = p_xy[:, 1:2, :]
        p_xmax = p_xy[:, 2:3, :]; p_ymax = p_xy[:, 3:4, :]

        ygt = ygt_ref[...]                             # (TB, N_OBJ, 8) f32
        b_xmin = ygt[:, :, 0:1]; b_ymin = ygt[:, :, 1:2]
        b_xmax = ygt[:, :, 2:3]; b_ymax = ygt[:, :, 3:4]
        cls_col = ygt[:, :, 4:5]                       # class id as f32 (exact < 2^24)

        # ---- IoU(gt, prior): (TB, N_OBJ, P); prior axis on lanes -----------
        iw = jnp.maximum(jnp.minimum(b_xmax, p_xmax) - jnp.maximum(b_xmin, p_xmin), 0.0)
        ih = jnp.maximum(jnp.minimum(b_ymax, p_ymax) - jnp.maximum(b_ymin, p_ymin), 0.0)
        inter = iw * ih
        area_b = (b_xmax - b_xmin) * (b_ymax - b_ymin)           # (TB, N_OBJ, 1)
        area_p = (p_xmax - p_xmin) * (p_ymax - p_ymin)           # (1, 1, P)
        # NOTE: no epsilon (matches the PyTorch module); a degenerate zero-area GT
        # box with zero intersection would produce NaN here (upstream data hazard).
        iou = inter / (area_b + area_p - inter)

        # minimal-shape iotas; broadcasting does the rest (perf-review item)
        obj_ids = jax.lax.broadcasted_iota(jnp.int32, (1, n_obj, 1), 1)
        pri_ids = jax.lax.broadcasted_iota(jnp.int32, (1, 1, n_pri), 2)

        # best object per prior (first arg-max over objects)
        ov_pp = jnp.max(iou, axis=1, keepdims=True)              # (TB, 1, P)
        obj_pp = jnp.min(jnp.where(iou >= ov_pp, obj_ids, n_obj),
                         axis=1, keepdims=True)                  # (TB, 1, P)
        # best prior per object (first arg-max over priors)
        ov_po = jnp.max(iou, axis=2, keepdims=True)              # (TB, N_OBJ, 1)
        pri_po = jnp.min(jnp.where(iou >= ov_po, pri_ids, n_pri),
                         axis=2, keepdims=True)                  # (TB, N_OBJ, 1)

        # forced assignment: object_per_prior[prior_per_object[j]] = j (last wins)
        forced = pri_ids == pri_po                               # (TB, N_OBJ, P)
        forced_j = jnp.max(jnp.where(forced, obj_ids, -1), axis=1, keepdims=True)
        has_forced = forced_j >= 0
        obj_pp = jnp.where(has_forced, forced_j, obj_pp)
        ov_pp = jnp.where(has_forced, 1.0, ov_pp)

        onehot = (obj_ids == obj_pp).astype(jnp.float32)         # (TB, N_OBJ, P)

        # class per prior; background where overlap < threshold
        cls_row = jnp.sum(onehot * cls_col, axis=1, keepdims=True)   # (TB, 1, P)
        cls_row = jnp.where(ov_pp < thr, 0.0, cls_row)
        pos_row = (cls_row != 0.0).astype(jnp.float32)               # (TB, 1, P)

        # ---- gathered GT boxes (cxcywh) encoded against priors (gcxgcy) ----
        b_cx = (b_xmin + b_xmax) * 0.5
        b_cy = (b_ymin + b_ymax) * 0.5
        b_w = b_xmax - b_xmin
        b_h = b_ymax - b_ymin
        sel_cx = jnp.sum(onehot * b_cx, axis=1, keepdims=True)       # (TB, 1, P)
        sel_cy = jnp.sum(onehot * b_cy, axis=1, keepdims=True)
        sel_w = jnp.sum(onehot * b_w, axis=1, keepdims=True)
        sel_h = jnp.sum(onehot * b_h, axis=1, keepdims=True)

        p_cx = p_cxcy[:, 0:1, :]; p_cy = p_cxcy[:, 1:2, :]
        p_w = p_cxcy[:, 2:3, :];  p_h = p_cxcy[:, 3:4, :]
        g_cx = (sel_cx - p_cx) / (p_w / 10.0)
        g_cy = (sel_cy - p_cy) / (p_h / 10.0)
        g_w = jnp.log(sel_w / p_w) * 5.0
        g_h = jnp.log(sel_h / p_h) * 5.0

        # ---- predictions: natural-layout blocks, re-laid-out per image -----
        # Cheap in-kernel 2-D transposes (VMEM/XLU) replace the former wrapper-side
        # HBM transposes; cast native dtype (e.g. bf16) -> f32 in-register here.
        yl = jnp.stack([yhatloc_ref[t].T for t in range(tb)],
                       axis=0).astype(jnp.float32)                   # (TB, 4, P)
        logits = jnp.stack([yhatcls_ref[t].T for t in range(tb)],
                           axis=0).astype(jnp.float32)               # (TB, C, P)

        # localisation |yhat - true| summed over positive priors (all TB images)
        l1 = (jnp.abs(yl[:, 0:1, :] - g_cx) + jnp.abs(yl[:, 1:2, :] - g_cy)
              + jnp.abs(yl[:, 2:3, :] - g_w) + jnp.abs(yl[:, 3:4, :] - g_h))
        loc_sum = jnp.sum(l1 * pos_row, keepdims=True)               # (1, 1, 1)

        # ---- per-prior cross entropy: logsumexp - logit[true class] --------
        # Single traversal of the logits tile (already in vregs): the max, the
        # exp-sum and the true-class select all read the same `logits` value.
        cls_ids = jax.lax.broadcasted_iota(jnp.int32, (1, n_cls, 1), 1)
        is_true = cls_ids == cls_row.astype(jnp.int32)               # (TB, C, P)
        m = jnp.max(logits, axis=1, keepdims=True)                   # (TB, 1, P)
        sumexp = jnp.sum(jnp.exp(logits - m), axis=1, keepdims=True)
        true_logit = jnp.sum(jnp.where(is_true, logits, 0.0), axis=1, keepdims=True)
        conf = m + jnp.log(sumexp) - true_logit                      # (TB, 1, P)

        conf_pos_sum = jnp.sum(conf * pos_row, keepdims=True)        # (1, 1, 1)
        n_pos_img = jnp.sum(pos_row, axis=2, keepdims=True)          # (TB, 1, 1)
        n_pos_sum = jnp.sum(n_pos_img, keepdims=True)                # (1, 1, 1)

        # ---- hard-negative mining: batched rank-by-counting (no sort) ------
        # rank(p) = #{q : v[q] > v[p]}  (+ index tie-break); sum of top-k is
        # invariant to tie order, so it equals the sort-then-take-k sum.
        # Tie-break mask is hoisted/loop-free; v is moved to the sublane axis with
        # one tiny (1,P)->(P,1) transpose per image (no 128x128 transpose).
        # NOTE: keep the explicit tie-break -- exact-value ties (the zeroed
        # positives) would otherwise over-select and change the sum.
        # TODO(synk): O(P^2) pairwise ranking is fine at P=128; at real SSD P switch
        # to an exact bitwise binary search for the k-th value (O(P log)).
        conf_neg = jnp.where(pos_row > 0.0, 0.0, conf)               # (TB, 1, P)
        v_rows = jnp.stack([conf_neg[t].T for t in range(tb)], axis=0)  # (TB, P, 1)
        iq = jax.lax.broadcasted_iota(jnp.int32, (1, n_pri, 1), 1)
        ip = jax.lax.broadcasted_iota(jnp.int32, (1, 1, n_pri), 2)
        tie = iq < ip                                                # (1, P, P)
        above = (v_rows > conf_neg) | ((v_rows == conf_neg) & tie)   # (TB, P, P)
        rank = jnp.sum(above.astype(jnp.float32), axis=1, keepdims=True)  # (TB, 1, P)
        n_hard = ratio * n_pos_img                                   # (TB, 1, 1)
        hard = (rank < n_hard).astype(jnp.float32)                   # (TB, 1, P)
        hard_neg_sum = jnp.sum(conf_neg * hard, keepdims=True)       # (1, 1, 1)

        # ---- lane-dense partial-sum output: exactly one (8, 128) vreg store --
        row_ids = jax.lax.broadcasted_iota(jnp.int32, (1, 8, 128), 1)
        partial = (jnp.where(row_ids == 0, conf_pos_sum, 0.0)
                   + jnp.where(row_ids == 1, hard_neg_sum, 0.0)
                   + jnp.where(row_ids == 2, n_pos_sum, 0.0)
                   + jnp.where(row_ids == 3, loc_sum, 0.0))
        out_ref[...] = partial

    return kernel


def _pick_images_per_step(batch, images_per_block):
    # Choose TB as a divisor of batch (no pad-by-concatenate of the big tensors)
    # and <= batch//2 so the "parallel" grid axis has >= 2 steps for v7x's 2 TCs.
    # TODO(synk): for awkward/prime batches, pass the true batch via scalar
    # prefetch and mask padded images in-kernel instead of falling back to TB=1.
    target = max(1, min(int(images_per_block), batch // 2 if batch >= 2 else 1))
    for tb in range(target, 0, -1):
        if batch % tb == 0:
            return tb
    return 1


def _run_fused(priors8, ygt, yhat_locs, yhat_clss, threshold, neg_pos_ratio, tb):
    batch, n_obj, _ = ygt.shape
    _, n_pri, n_cls = yhat_clss.shape
    nblk = batch // tb
    kernel = make_multibox_kernel(threshold, neg_pos_ratio, tb, n_obj, n_pri, n_cls)

    # explicit scoped-VMEM limit (v6e default is 32 MiB, v5e 16 MiB); sized from
    # the (double-buffered) blocks and clamped to stay safe on v7x's 64 MiB parts.
    in_bytes = (priors8.size * priors8.dtype.itemsize
                + tb * n_obj * 8 * 4
                + tb * n_pri * 4 * yhat_locs.dtype.itemsize
                + tb * n_pri * n_cls * yhat_clss.dtype.itemsize)
    vmem_limit = int(min(max(4 * in_bytes + (16 << 20), 32 << 20), 96 << 20))

    grid_spec = pltpu.PrefetchScalarGridSpec(
        num_scalar_prefetch=0,
        grid=(nblk,),
        in_specs=[
            pl.BlockSpec((8, n_pri), lambda b: (0, 0)),             # packed priors (1 vreg)
            pl.BlockSpec((tb, n_obj, 8), lambda b: (b, 0, 0)),      # GT boxes + class
            pl.BlockSpec((tb, n_pri, 4), lambda b: (b, 0, 0)),      # offsets, natural layout
            pl.BlockSpec((tb, n_pri, n_cls), lambda b: (b, 0, 0)),  # logits, natural layout
        ],
        out_specs=pl.BlockSpec((1, 8, 128), lambda b: (b, 0, 0)),
    )
    return pl.pallas_call(
        kernel,
        out_shape=jax.ShapeDtypeStruct((nblk, 8, 128), jnp.float32),
        grid_spec=grid_spec,
        compiler_params=pltpu.CompilerParams(
            dimension_semantics=("parallel",),
            vmem_limit_bytes=vmem_limit),
    )(priors8, ygt, yhat_locs, yhat_clss)


# --------------------------------------------------------------------------- #
# Module wrapper (mirrors MultiboxLoss.forward)
# --------------------------------------------------------------------------- #
class MultiboxLossPallas:
    def __init__(self, priors_cxcy, threshold=0.0, neg_pos_ratio=3, alpha=1.0,
                 images_per_block=8):
        self.priors_cxcy = jnp.asarray(priors_cxcy, jnp.float32)
        self.priors_xy = cxcy_to_xy(self.priors_cxcy)
        # packed prior block: rows 0-3 = xy corners, rows 4-7 = cxcywh
        self.priors8 = jnp.concatenate([self.priors_xy.T, self.priors_cxcy.T], axis=0)
        # NOTE: default threshold=0.0 mirrors the PyTorch module's signature
        # (the canonical SSD value 0.5 must be passed explicitly).
        self.threshold = float(threshold)
        self.neg_pos_ratio = neg_pos_ratio
        self.alpha = alpha
        self.images_per_block = int(images_per_block)

    def __call__(self, yhat_locs, yhat_clss, y_locs, y_clss):
        batch, n_pri, n_cls = yhat_clss.shape
        n_obj = y_locs.shape[1]
        assert self.priors_xy.shape[0] == n_pri == yhat_locs.shape[1]

        tb = _pick_images_per_step(batch, self.images_per_block)

        # tiny GT tensor only: fold class id into a 5th column, pad to 8 cols
        # (class as f32 is exact while num_classes < 2^24).
        ygt = jnp.concatenate(
            [y_locs.astype(jnp.float32),
             y_clss.astype(jnp.float32)[..., None],
             jnp.zeros((batch, n_obj, 3), jnp.float32)], axis=-1)

        # yhat_locs / yhat_clss are passed in natural layout and native dtype:
        # no wrapper transpose and no f32 upcast (the kernel re-lays them out per
        # image in VMEM and casts in-register; pass bf16 in production).
        partials = _run_fused(self.priors8, ygt, yhat_locs, yhat_clss,
                              self.threshold, self.neg_pos_ratio, tb)  # (nblk, 8, 128)

        # trivial scalar epilogue on 4 partial sums (per-block, lane 0 of each row)
        sums = jnp.sum(partials[:, :, 0], axis=0)             # (8,)
        conf_pos_sum, hard_neg_sum = sums[0], sums[1]
        n_pos_total, loc_sum = sums[2], sums[3]
        # NOTE: like the PyTorch module, no clamp on n_pos_total; an
        # all-background batch yields NaN/Inf.
        conf_loss = (hard_neg_sum + conf_pos_sum) / n_pos_total
        loc_loss = loc_sum / (n_pos_total * 4.0)               # nn.L1Loss mean over pos
        return conf_loss + self.alpha * loc_loss


# --------------------------------------------------------------------------- #
# Pure-JAX reference (same semantics as the PyTorch module) for validation.
# --------------------------------------------------------------------------- #
def reference_multibox_loss(yhat_locs, yhat_clss, y_locs, y_clss,
                            priors_cxcy, priors_xy, threshold, neg_pos_ratio, alpha):
    _, n_pri, _ = yhat_clss.shape
    n_obj = y_locs.shape[1]

    def match_one(boxes, clss):
        lx = jnp.maximum(boxes[:, None, 0], priors_xy[None, :, 0])
        ly = jnp.maximum(boxes[:, None, 1], priors_xy[None, :, 1])
        ux = jnp.minimum(boxes[:, None, 2], priors_xy[None, :, 2])
        uy = jnp.minimum(boxes[:, None, 3], priors_xy[None, :, 3])
        inter = jnp.clip(ux - lx, 0.0) * jnp.clip(uy - ly, 0.0)
        area_b = (boxes[:, 2] - boxes[:, 0]) * (boxes[:, 3] - boxes[:, 1])
        area_p = (priors_xy[:, 2] - priors_xy[:, 0]) * (priors_xy[:, 3] - priors_xy[:, 1])
        iou = inter / (area_b[:, None] + area_p[None, :] - inter)
        ov_pp = iou.max(axis=0)
        obj_pp = iou.argmax(axis=0)
        pri_po = iou.argmax(axis=1)
        forced_j = jnp.max(jnp.where(jnp.arange(n_pri)[None, :] == pri_po[:, None],
                                     jnp.arange(n_obj)[:, None], -1), axis=0)
        obj_pp = jnp.where(forced_j >= 0, forced_j, obj_pp)
        ov_pp = jnp.where(forced_j >= 0, 1.0, ov_pp)
        cls_pp = clss[obj_pp]
        cls_pp = jnp.where(ov_pp < threshold, 0, cls_pp)
        sel = boxes[obj_pp]
        cx = (sel[:, 0] + sel[:, 2]) / 2.0
        cy = (sel[:, 1] + sel[:, 3]) / 2.0
        w = sel[:, 2] - sel[:, 0]
        h = sel[:, 3] - sel[:, 1]
        g = jnp.stack([(cx - priors_cxcy[:, 0]) / (priors_cxcy[:, 2] / 10.0),
                       (cy - priors_cxcy[:, 1]) / (priors_cxcy[:, 3] / 10.0),
                       jnp.log(w / priors_cxcy[:, 2]) * 5.0,
                       jnp.log(h / priors_cxcy[:, 3]) * 5.0], axis=1)
        return g, cls_pp

    true_locs, true_clss = jax.vmap(match_one)(y_locs, y_clss)
    pos = true_clss != 0
    n_pos_total = jnp.sum(pos).astype(jnp.float32)
    loc_loss = jnp.sum(jnp.abs(yhat_locs - true_locs) * pos[..., None]) / (n_pos_total * 4.0)
    lse = jax.scipy.special.logsumexp(yhat_clss, axis=-1)
    true_logit = jnp.take_along_axis(yhat_clss, true_clss[..., None], axis=-1)[..., 0]
    conf = lse - true_logit
    n_pos = jnp.sum(pos, axis=1)
    conf_neg = jnp.where(pos, 0.0, conf)
    sorted_neg = -jnp.sort(-conf_neg, axis=1)
    ranks = jnp.arange(n_pri)[None, :]
    hard = ranks < (neg_pos_ratio * n_pos)[:, None]
    conf_total = (jnp.sum(sorted_neg * hard) + jnp.sum(conf * pos)) / n_pos_total
    return conf_total + alpha * loc_loss


if __name__ == "__main__":
    B, P, N_OBJ, C = 2, 128, 8, 16
    key = jax.random.PRNGKey(0)
    kp1, kp2, kb1, kb2, kc, kl, ks = jax.random.split(key, 7)

    # deterministic synthetic priors (cxcywh) and data
    prior_ctr = jax.random.uniform(kp1, (P, 2), minval=0.1, maxval=0.9)
    prior_wh = jax.random.uniform(kp2, (P, 2), minval=0.1, maxval=0.4)
    priors_cxcy = jnp.concatenate([prior_ctr, prior_wh], axis=1).astype(jnp.float32)

    obj_ctr = jax.random.uniform(kb1, (B, N_OBJ, 2), minval=0.25, maxval=0.75)
    obj_wh = jax.random.uniform(kb2, (B, N_OBJ, 2), minval=0.10, maxval=0.35)
    y_locs = jnp.concatenate([obj_ctr - obj_wh / 2.0, obj_ctr + obj_wh / 2.0],
                             axis=-1).astype(jnp.float32)
    y_clss = jax.random.randint(kc, (B, N_OBJ), 1, C).astype(jnp.int32)

    yhat_locs = jax.random.normal(kl, (B, P, 4), dtype=jnp.float32)
    yhat_clss = jax.random.normal(ks, (B, P, C), dtype=jnp.float32)

    loss_mod = MultiboxLossPallas(priors_cxcy, threshold=0.5, neg_pos_ratio=3, alpha=1.0)
    loss = loss_mod(yhat_locs, yhat_clss, y_locs, y_clss)
    loss = jax.block_until_ready(loss)

    ref = reference_multibox_loss(yhat_locs, yhat_clss, y_locs, y_clss,
                                  priors_cxcy, loss_mod.priors_xy,
                                  0.5, 3, 1.0)
    ref = jax.block_until_ready(ref)

    assert np.isfinite(float(loss))
    np.testing.assert_allclose(float(loss), float(ref), rtol=2e-3, atol=2e-3)
    print("KERNEL_OK")
</pallas_src>

<mosaic_0001>
module attributes {stable_mosaic.version = 11 : i64} {
  func.func @kernel(%arg0: i32, %arg1: memref<8x128xf32, #tpu.memory_space<vmem>>, %arg2: memref<1x8x8xf32, #tpu.memory_space<vmem>>, %arg3: memref<1x128x4xf32, #tpu.memory_space<vmem>>, %arg4: memref<1x128x16xf32, #tpu.memory_space<vmem>>, %arg5: memref<1x8x128xf32, #tpu.memory_space<vmem>>) attributes {dimension_semantics = [#tpu.dimension_semantics<parallel>], iteration_bounds = array<i64: 2>, scalar_prefetch = 0 : i64, scratch_operands = 0 : i64, tpu.core_type = #tpu.core_type<tc>, window_params = [{pipeline_mode = #tpu.pipeline_mode<synchronous>, transform_indices = @transform_0, window_bounds = array<i64: 8, 128>}, {transform_indices = @transform_1, window_bounds = array<i64: 1, 8, 8>}, {transform_indices = @transform_2, window_bounds = array<i64: 1, 128, 4>}, {transform_indices = @transform_3, window_bounds = array<i64: 1, 128, 16>}, {transform_indices = @transform_4, window_bounds = array<i64: 1, 8, 128>}]} {
    %c0 = arith.constant 0 : index
    %c0_0 = arith.constant 0 : index
    %0 = vector.load %arg1[%c0, %c0_0] : memref<8x128xf32, #tpu.memory_space<vmem>>, vector<8x128xf32>
    %1 = vector.extract_strided_slice %0 {offsets = [0, 0], sizes = [4, 128], strides = [1, 1]} : vector<8x128xf32> to vector<4x128xf32>
    %2 = vector.shape_cast %1 : vector<4x128xf32> to vector<1x4x128xf32>
    %3 = vector.extract_strided_slice %0 {offsets = [4, 0], sizes = [4, 128], strides = [1, 1]} : vector<8x128xf32> to vector<4x128xf32>
    %4 = vector.shape_cast %3 : vector<4x128xf32> to vector<1x4x128xf32>
    %5 = vector.extract_strided_slice %2 {offsets = [0, 0, 0], sizes = [1, 1, 128], strides = [1, 1, 1]} : vector<1x4x128xf32> to vector<1x1x128xf32>
    %6 = vector.extract_strided_slice %2 {offsets = [0, 1, 0], sizes = [1, 1, 128], strides = [1, 1, 1]} : vector<1x4x128xf32> to vector<1x1x128xf32>
    %7 = vector.extract_strided_slice %2 {offsets = [0, 2, 0], sizes = [1, 1, 128], strides = [1, 1, 1]} : vector<1x4x128xf32> to vector<1x1x128xf32>
    %8 = vector.extract_strided_slice %2 {offsets = [0, 3, 0], sizes = [1, 1, 128], strides = [1, 1, 1]} : vector<1x4x128xf32> to vector<1x1x128xf32>
    %c0_1 = arith.constant 0 : index
    %c0_2 = arith.constant 0 : index
    %c0_3 = arith.constant 0 : index
    %9 = vector.load %arg2[%c0_1, %c0_2, %c0_3] : memref<1x8x8xf32, #tpu.memory_space<vmem>>, vector<1x8x8xf32>
    %10 = vector.extract_strided_slice %9 {offsets = [0, 0, 0], sizes = [1, 8, 1], strides = [1, 1, 1]} : vector<1x8x8xf32> to vector<1x8x1xf32>
    %11 = vector.extract_strided_slice %9 {offsets = [0, 0, 1], sizes = [1, 8, 1], strides = [1, 1, 1]} : vector<1x8x8xf32> to vector<1x8x1xf32>
    %12 = vector.extract_strided_slice %9 {offsets = [0, 0, 2], sizes = [1, 8, 1], strides = [1, 1, 1]} : vector<1x8x8xf32> to vector<1x8x1xf32>
    %13 = vector.extract_strided_slice %9 {offsets = [0, 0, 3], sizes = [1, 8, 1], strides = [1, 1, 1]} : vector<1x8x8xf32> to vector<1x8x1xf32>
    %14 = vector.extract_strided_slice %9 {offsets = [0, 0, 4], sizes = [1, 8, 1], strides = [1, 1, 1]} : vector<1x8x8xf32> to vector<1x8x1xf32>
    %15 = vector.broadcast %12 : vector<1x8x1xf32> to vector<1x8x128xf32>
    %16 = vector.broadcast %7 : vector<1x1x128xf32> to vector<1x8x128xf32>
    %17 = arith.minimumf %15, %16 : vector<1x8x128xf32>
    %18 = vector.broadcast %10 : vector<1x8x1xf32> to vector<1x8x128xf32>
    %19 = vector.broadcast %5 : vector<1x1x128xf32> to vector<1x8x128xf32>
    %20 = arith.maximumf %18, %19 : vector<1x8x128xf32>
    %21 = arith.subf %17, %20 : vector<1x8x128xf32>
    %cst = arith.constant 0.000000e+00 : f32
    %22 = vector.broadcast %cst : f32 to vector<1x8x128xf32>
    %23 = arith.maximumf %21, %22 : vector<1x8x128xf32>
    %24 = vector.broadcast %13 : vector<1x8x1xf32> to vector<1x8x128xf32>
    %25 = vector.broadcast %8 : vector<1x1x128xf32> to vector<1x8x128xf32>
    %26 = arith.minimumf %24, %25 : vector<1x8x128xf32>
    %27 = vector.broadcast %11 : vector<1x8x1xf32> to vector<1x8x128xf32>
    %28 = vector.broadcast %6 : vector<1x1x128xf32> to vector<1x8x128xf32>
    %29 = arith.maximumf %27, %28 : vector<1x8x128xf32>
    %30 = arith.subf %26, %29 : vector<1x8x128xf32>
    %cst_4 = arith.constant 0.000000e+00 : f32
    %31 = vector.broadcast %cst_4 : f32 to vector<1x8x128xf32>
    %32 = arith.maximumf %30, %31 : vector<1x8x128xf32>
    %33 = arith.mulf %23, %32 : vector<1x8x128xf32>
    %34 = arith.subf %12, %10 : vector<1x8x1xf32>
    %35 = arith.subf %13, %11 : vector<1x8x1xf32>
    %36 = arith.mulf %34, %35 : vector<1x8x1xf32>
    %37 = arith.subf %7, %5 : vector<1x1x128xf32>
    %38 = arith.subf %8, %6 : vector<1x1x128xf32>
    %39 = arith.mulf %37, %38 : vector<1x1x128xf32>
    %40 = vector.broadcast %36 : vector<1x8x1xf32> to vector<1x8x128xf32>
    %41 = vector.broadcast %39 : vector<1x1x128xf32> to vector<1x8x128xf32>
    %42 = arith.addf %40, %41 : vector<1x8x128xf32>
    %43 = arith.subf %42, %33 : vector<1x8x128xf32>
    %44 = arith.divf %33, %43 : vector<1x8x128xf32>
    %45 = tpu.iota {dimensions = array<i32: 1>} : vector<1x8x1xi32>
    %46 = tpu.iota {dimensions = array<i32: 2>} : vector<1x1x128xi32>
    %cst_5 = arith.constant dense<0xFF800000> : vector<1x128xf32>
    %47 = vector.multi_reduction <maximumf>, %44, %cst_5 [1] : vector<1x8x128xf32> to vector<1x128xf32>
    %48 = vector.shape_cast %47 : vector<1x128xf32> to vector<1x1x128xf32>
    %49 = vector.broadcast %48 : vector<1x1x128xf32> to vector<1x8x128xf32>
    %50 = arith.cmpf oge, %44, %49 : vector<1x8x128xf32>
    %c8_i32 = arith.constant 8 : i32
    %51 = vector.shape_cast %45 : vector<1x8x1xi32> to vector<1x8x1xi32>
    %52 = vector.broadcast %51 : vector<1x8x1xi32> to vector<1x8x128xi32>
    %53 = vector.broadcast %c8_i32 : i32 to vector<1x8x128xi32>
    %54 = arith.select %50, %52, %53 : vector<1x8x128xi1>, vector<1x8x128xi32>
    %cst_6 = arith.constant dense<2147483647> : vector<1x128xi32>
    %55 = vector.multi_reduction <minsi>, %54, %cst_6 [1] : vector<1x8x128xi32> to vector<1x128xi32>
    %56 = vector.shape_cast %55 : vector<1x128xi32> to vector<1x1x128xi32>
    %cst_7 = arith.constant dense<0xFF800000> : vector<1x8xf32>
    %57 = vector.multi_reduction <maximumf>, %44, %cst_7 [2] : vector<1x8x128xf32> to vector<1x8xf32>
    %58 = vector.shape_cast %57 : vector<1x8xf32> to vector<1x8x1xf32>
    %59 = vector.broadcast %58 : vector<1x8x1xf32> to vector<1x8x128xf32>
    %60 = arith.cmpf oge, %44, %59 : vector<1x8x128xf32>
    %c128_i32 = arith.constant 128 : i32
    %61 = vector.shape_cast %46 : vector<1x1x128xi32> to vector<1x1x128xi32>
    %62 = vector.broadcast %61 : vector<1x1x128xi32> to vector<1x8x128xi32>
    %63 = vector.broadcast %c128_i32 : i32 to vector<1x8x128xi32>
    %64 = arith.select %60, %62, %63 : vector<1x8x128xi1>, vector<1x8x128xi32>
    %cst_8 = arith.constant dense<2147483647> : vector<1x8xi32>
    %65 = vector.multi_reduction <minsi>, %64, %cst_8 [2] : vector<1x8x128xi32> to vector<1x8xi32>
    %66 = vector.shape_cast %65 : vector<1x8xi32> to vector<1x8x1xi32>
    %67 = vector.broadcast %46 : vector<1x1x128xi32> to vector<1x8x128xi32>
    %68 = vector.broadcast %66 : vector<1x8x1xi32> to vector<1x8x128xi32>
    %69 = arith.cmpi eq, %67, %68 : vector<1x8x128xi32>
    %c-1_i32 = arith.constant -1 : i32
    %70 = vector.shape_cast %45 : vector<1x8x1xi32> to vector<1x8x1xi32>
    %71 = vector.broadcast %70 : vector<1x8x1xi32> to vector<1x8x128xi32>
    %72 = vector.broadcast %c-1_i32 : i32 to vector<1x8x128xi32>
    %73 = arith.select %69, %71, %72 : vector<1x8x128xi1>, vector<1x8x128xi32>
    %cst_9 = arith.constant dense<-2147483648> : vector<1x128xi32>
    %74 = vector.multi_reduction <maxsi>, %73, %cst_9 [1] : vector<1x8x128xi32> to vector<1x128xi32>
    %75 = vector.shape_cast %74 : vector<1x128xi32> to vector<1x1x128xi32>
    %c0_i32 = arith.constant 0 : i32
    %76 = vector.broadcast %c0_i32 : i32 to vector<1x1x128xi32>
    %77 = arith.cmpi sge, %75, %76 : vector<1x1x128xi32>
    %78 = arith.select %77, %75, %56 : vector<1x1x128xi1>, vector<1x1x128xi32>
    %cst_10 = arith.constant 1.000000e+00 : f32
    %79 = vector.broadcast %cst_10 : f32 to vector<1x1x128xf32>
    %80 = arith.select %77, %79, %48 : vector<1x1x128xi1>, vector<1x1x128xf32>
    %81 = vector.broadcast %45 : vector<1x8x1xi32> to vector<1x8x128xi32>
    %82 = vector.broadcast %78 : vector<1x1x128xi32> to vector<1x8x128xi32>
    %83 = arith.cmpi eq, %81, %82 : vector<1x8x128xi32>
    %84 = arith.extui %83 : vector<1x8x128xi1> to vector<1x8x128xi32>
    %85 = arith.sitofp %84 : vector<1x8x128xi32> to vector<1x8x128xf32>
    %86 = vector.broadcast %14 : vector<1x8x1xf32> to vector<1x8x128xf32>
    %87 = arith.mulf %85, %86 : vector<1x8x128xf32>
    %cst_11 = arith.constant dense<0.000000e+00> : vector<1x128xf32>
    %88 = vector.multi_reduction <add>, %87, %cst_11 [1] : vector<1x8x128xf32> to vector<1x128xf32>
    %89 = vector.shape_cast %88 : vector<1x128xf32> to vector<1x1x128xf32>
    %cst_12 = arith.constant 5.000000e-01 : f32
    %90 = vector.broadcast %cst_12 : f32 to vector<1x1x128xf32>
    %91 = arith.cmpf olt, %80, %90 : vector<1x1x128xf32>
    %cst_13 = arith.constant 0.000000e+00 : f32
    %92 = vector.broadcast %cst_13 : f32 to vector<1x1x128xf32>
    %93 = arith.select %91, %92, %89 : vector<1x1x128xi1>, vector<1x1x128xf32>
    %cst_14 = arith.constant 0.000000e+00 : f32
    %94 = vector.broadcast %cst_14 : f32 to vector<1x1x128xf32>
    %95 = arith.cmpf one, %93, %94 : vector<1x1x128xf32>
    %96 = arith.extui %95 : vector<1x1x128xi1> to vector<1x1x128xi32>
    %97 = arith.sitofp %96 : vector<1x1x128xi32> to vector<1x1x128xf32>
    %98 = arith.addf %10, %12 : vector<1x8x1xf32>
    %cst_15 = arith.constant 5.000000e-01 : f32
    %99 = vector.broadcast %cst_15 : f32 to vector<1x8x1xf32>
    %100 = arith.mulf %98, %99 : vector<1x8x1xf32>
    %101 = arith.addf %11, %13 : vector<1x8x1xf32>
    %cst_16 = arith.constant 5.000000e-01 : f32
    %102 = vector.broadcast %cst_16 : f32 to vector<1x8x1xf32>
    %103 = arith.mulf %101, %102 : vector<1x8x1xf32>
    %104 = arith.subf %12, %10 : vector<1x8x1xf32>
    %105 = arith.subf %13, %11 : vector<1x8x1xf32>
    %106 = vector.broadcast %100 : vector<1x8x1xf32> to vector<1x8x128xf32>
    %107 = arith.mulf %85, %106 : vector<1x8x128xf32>
    %cst_17 = arith.constant dense<0.000000e+00> : vector<1x128xf32>
    %108 = vector.multi_reduction <add>, %107, %cst_17 [1] : vector<1x8x128xf32> to vector<1x128xf32>
    %109 = vector.shape_cast %108 : vector<1x128xf32> to vector<1x1x128xf32>
    %110 = vector.broadcast %103 : vector<1x8x1xf32> to vector<1x8x128xf32>
    %111 = arith.mulf %85, %110 : vector<1x8x128xf32>
    %cst_18 = arith.constant dense<0.000000e+00> : vector<1x128xf32>
    %112 = vector.multi_reduction <add>, %111, %cst_18 [1] : vector<1x8x128xf32> to vector<1x128xf32>
    %113 = vector.shape_cast %112 : vector<1x128xf32> to vector<1x1x128xf32>
    %114 = vector.broadcast %104 : vector<1x8x1xf32> to vector<1x8x128xf32>
    %115 = arith.mulf %85, %114 : vector<1x8x128xf32>
    %cst_19 = arith.constant dense<0.000000e+00> : vector<1x128xf32>
    %116 = vector.multi_reduction <add>, %115, %cst_19 [1] : vector<1x8x128xf32> to vector<1x128xf32>
    %117 = vector.shape_cast %116 : vector<1x128xf32> to vector<1x1x128xf32>
    %118 = vector.broadcast %105 : vector<1x8x1xf32> to vector<1x8x128xf32>
    %119 = arith.mulf %85, %118 : vector<1x8x128xf32>
    %cst_20 = arith.constant dense<0.000000e+00> : vector<1x128xf32>
    %120 = vector.multi_reduction <add>, %119, %cst_20 [1] : vector<1x8x128xf32> to vector<1x128xf32>
    %121 = vector.shape_cast %120 : vector<1x128xf32> to vector<1x1x128xf32>
    %122 = vector.extract_strided_slice %4 {offsets = [0, 0, 0], sizes = [1, 1, 128], strides = [1, 1, 1]} : vector<1x4x128xf32> to vector<1x1x128xf32>
    %123 = vector.extract_strided_slice %4 {offsets = [0, 1, 0], sizes = [1, 1, 128], strides = [1, 1, 1]} : vector<1x4x128xf32> to vector<1x1x128xf32>
    %124 = vector.extract_strided_slice %4 {offsets = [0, 2, 0], sizes = [1, 1, 128], strides = [1, 1, 1]} : vector<1x4x128xf32> to vector<1x1x128xf32>
    %125 = vector.extract_strided_slice %4 {offsets = [0, 3, 0], sizes = [1, 1, 128], strides = [1, 1, 1]} : vector<1x4x128xf32> to vector<1x1x128xf32>
    %126 = arith.subf %109, %122 : vector<1x1x128xf32>
    %cst_21 = arith.constant 1.000000e+01 : f32
    %127 = vector.broadcast %cst_21 : f32 to vector<1x1x128xf32>
    %128 = arith.divf %124, %127 : vector<1x1x128xf32>
    %129 = arith.divf %126, %128 : vector<1x1x128xf32>
    %130 = arith.subf %113, %123 : vector<1x1x128xf32>
    %cst_22 = arith.constant 1.000000e+01 : f32
    %131 = vector.broadcast %cst_22 : f32 to vector<1x1x128xf32>
    %132 = arith.divf %125, %131 : vector<1x1x128xf32>
    %133 = arith.divf %130, %132 : vector<1x1x128xf32>
    %134 = arith.divf %117, %124 : vector<1x1x128xf32>
    %135 = math.log %134 : vector<1x1x128xf32>
    %cst_23 = arith.constant 5.000000e+00 : f32
    %136 = vector.broadcast %cst_23 : f32 to vector<1x1x128xf32>
    %137 = arith.mulf %135, %136 : vector<1x1x128xf32>
    %138 = arith.divf %121, %125 : vector<1x1x128xf32>
    %139 = math.log %138 : vector<1x1x128xf32>
    %cst_24 = arith.constant 5.000000e+00 : f32
    %140 = vector.broadcast %cst_24 : f32 to vector<1x1x128xf32>
    %141 = arith.mulf %139, %140 : vector<1x1x128xf32>
    %c0_25 = arith.constant 0 : index
    %c0_26 = arith.constant 0 : index
    %c0_27 = arith.constant 0 : index
    %142 = vector.load %arg3[%c0_25, %c0_26, %c0_27] : memref<1x128x4xf32, #tpu.memory_space<vmem>>, vector<1x128x4xf32>
    %143 = vector.shape_cast %142 : vector<1x128x4xf32> to vector<128x4xf32>
    %144 = tpu.transpose %143, [1, 0] : vector<128x4xf32> -> vector<4x128xf32>
    %145 = vector.shape_cast %144 : vector<4x128xf32> to vector<1x4x128xf32>
    %c0_28 = arith.constant 0 : index
    %c0_29 = arith.constant 0 : index
    %c0_30 = arith.constant 0 : index
    %146 = vector.load %arg4[%c0_28, %c0_29, %c0_30] : memref<1x128x16xf32, #tpu.memory_space<vmem>>, vector<1x128x16xf32>
    %147 = vector.shape_cast %146 : vector<1x128x16xf32> to vector<128x16xf32>
    %148 = tpu.transpose %147, [1, 0] : vector<128x16xf32> -> vector<16x128xf32>
    %149 = vector.shape_cast %148 : vector<16x128xf32> to vector<1x16x128xf32>
    %150 = vector.extract_strided_slice %145 {offsets = [0, 0, 0], sizes = [1, 1, 128], strides = [1, 1, 1]} : vector<1x4x128xf32> to vector<1x1x128xf32>
    %151 = arith.subf %150, %129 : vector<1x1x128xf32>
    %152 = math.absf %151 : vector<1x1x128xf32>
    %153 = vector.extract_strided_slice %145 {offsets = [0, 1, 0], sizes = [1, 1, 128], strides = [1, 1, 1]} : vector<1x4x128xf32> to vector<1x1x128xf32>
    %154 = arith.subf %153, %133 : vector<1x1x128xf32>
    %155 = math.absf %154 : vector<1x1x128xf32>
    %156 = arith.addf %152, %155 : vector<1x1x128xf32>
    %157 = vector.extract_strided_slice %145 {offsets = [0, 2, 0], sizes = [1, 1, 128], strides = [1, 1, 1]} : vector<1x4x128xf32> to vector<1x1x128xf32>
    %158 = arith.subf %157, %137 : vector<1x1x128xf32>
    %159 = math.absf %158 : vector<1x1x128xf32>
    %160 = arith.addf %156, %159 : vector<1x1x128xf32>
    %161 = vector.extract_strided_slice %145 {offsets = [0, 3, 0], sizes = [1, 1, 128], strides = [1, 1, 1]} : vector<1x4x128xf32> to vector<1x1x128xf32>
    %162 = arith.subf %161, %141 : vector<1x1x128xf32>
    %163 = math.absf %162 : vector<1x1x128xf32>
    %164 = arith.addf %160, %163 : vector<1x1x128xf32>
    %165 = arith.mulf %164, %97 : vector<1x1x128xf32>
    %166 = vector.shape_cast %165 : vector<1x1x128xf32> to vector<1x1x1x128xf32>
    %cst_31 = arith.constant dense<0.000000e+00> : vector<1xf32>
    %167 = vector.multi_reduction <add>, %166, %cst_31 [1, 2, 3] : vector<1x1x1x128xf32> to vector<1xf32>
    %168 = vector.shape_cast %167 : vector<1xf32> to vector<1x1x1x1xf32>
    %169 = vector.extract %168[0, 0, 0, 0] : f32 from vector<1x1x1x1xf32>
    %170 = vector.broadcast %169 : f32 to vector<1x1x1xf32>
    %171 = tpu.iota {dimensions = array<i32: 1>} : vector<1x16x1xi32>
    %172 = arith.fptosi %93 : vector<1x1x128xf32> to vector<1x1x128xi32>
    %173 = vector.broadcast %171 : vector<1x16x1xi32> to vector<1x16x128xi32>
    %174 = vector.broadcast %172 : vector<1x1x128xi32> to vector<1x16x128xi32>
    %175 = arith.cmpi eq, %173, %174 : vector<1x16x128xi32>
    %cst_32 = arith.constant dense<0xFF800000> : vector<1x128xf32>
    %176 = vector.multi_reduction <maximumf>, %149, %cst_32 [1] : vector<1x16x128xf32> to vector<1x128xf32>
    %177 = vector.shape_cast %176 : vector<1x128xf32> to vector<1x1x128xf32>
    %178 = vector.broadcast %177 : vector<1x1x128xf32> to vector<1x16x128xf32>
    %179 = arith.subf %149, %178 : vector<1x16x128xf32>
    %180 = math.exp %179 : vector<1x16x128xf32>
    %cst_33 = arith.constant dense<0.000000e+00> : vector<1x128xf32>
    %181 = vector.multi_reduction <add>, %180, %cst_33 [1] : vector<1x16x128xf32> to vector<1x128xf32>
    %182 = vector.shape_cast %181 : vector<1x128xf32> to vector<1x1x128xf32>
    %cst_34 = arith.constant 0.000000e+00 : f32
    %183 = vector.broadcast %cst_34 : f32 to vector<1x16x128xf32>
    %184 = arith.select %175, %149, %183 : vector<1x16x128xi1>, vector<1x16x128xf32>
    %cst_35 = arith.constant dense<0.000000e+00> : vector<1x128xf32>
    %185 = vector.multi_reduction <add>, %184, %cst_35 [1] : vector<1x16x128xf32> to vector<1x128xf32>
    %186 = vector.shape_cast %185 : vector<1x128xf32> to vector<1x1x128xf32>
    %187 = math.log %182 : vector<1x1x128xf32>
    %188 = arith.addf %177, %187 : vector<1x1x128xf32>
    %189 = arith.subf %188, %186 : vector<1x1x128xf32>
    %190 = arith.mulf %189, %97 : vector<1x1x128xf32>
    %191 = vector.shape_cast %190 : vector<1x1x128xf32> to vector<1x1x1x128xf32>
    %cst_36 = arith.constant dense<0.000000e+00> : vector<1xf32>
    %192 = vector.multi_reduction <add>, %191, %cst_36 [1, 2, 3] : vector<1x1x1x128xf32> to vector<1xf32>
    %193 = vector.shape_cast %192 : vector<1xf32> to vector<1x1x1x1xf32>
    %194 = vector.extract %193[0, 0, 0, 0] : f32 from vector<1x1x1x1xf32>
    %195 = vector.broadcast %194 : f32 to vector<1x1x1xf32>
    %cst_37 = arith.constant dense<0.000000e+00> : vector<1x1xf32>
    %196 = vector.multi_reduction <add>, %97, %cst_37 [2] : vector<1x1x128xf32> to vector<1x1xf32>
    %197 = vector.shape_cast %196 : vector<1x1xf32> to vector<1x1x1xf32>
    %198 = vector.shape_cast %197 : vector<1x1x1xf32> to vector<1x1x1x1xf32>
    %cst_38 = arith.constant dense<0.000000e+00> : vector<1xf32>
    %199 = vector.multi_reduction <add>, %198, %cst_38 [1, 2, 3] : vector<1x1x1x1xf32> to vector<1xf32>
    %200 = vector.shape_cast %199 : vector<1xf32> to vector<1x1x1x1xf32>
    %201 = vector.extract %200[0, 0, 0, 0] : f32 from vector<1x1x1x1xf32>
    %202 = vector.broadcast %201 : f32 to vector<1x1x1xf32>
    %cst_39 = arith.constant 0.000000e+00 : f32
    %203 = vector.broadcast %cst_39 : f32 to vector<1x1x128xf32>
    %204 = arith.cmpf ogt, %97, %203 : vector<1x1x128xf32>
    %cst_40 = arith.constant 0.000000e+00 : f32
    %205 = vector.broadcast %cst_40 : f32 to vector<1x1x128xf32>
    %206 = arith.select %204, %205, %189 : vector<1x1x128xi1>, vector<1x1x128xf32>
    %207 = vector.shape_cast %206 : vector<1x1x128xf32> to vector<1x128xf32>
    %208 = tpu.transpose %207, [1, 0] : vector<1x128xf32> -> vector<128x1xf32>
    %209 = vector.shape_cast %208 : vector<128x1xf32> to vector<1x128x1xf32>
    %210 = tpu.iota {dimensions = array<i32: 1>} : vector<1x128x1xi32>
    %211 = tpu.iota {dimensions = array<i32: 2>} : vector<1x1x128xi32>
    %212 = vector.broadcast %210 : vector<1x128x1xi32> to vector<1x128x128xi32>
    %213 = vector.broadcast %211 : vector<1x1x128xi32> to vector<1x128x128xi32>
    %214 = arith.cmpi slt, %212, %213 : vector<1x128x128xi32>
    %215 = vector.broadcast %209 : vector<1x128x1xf32> to vector<1x128x128xf32>
    %216 = vector.broadcast %206 : vector<1x1x128xf32> to vector<1x128x128xf32>
    %217 = arith.cmpf ogt, %215, %216 : vector<1x128x128xf32>
    %218 = vector.broadcast %209 : vector<1x128x1xf32> to vector<1x128x128xf32>
    %219 = vector.broadcast %206 : vector<1x1x128xf32> to vector<1x128x128xf32>
    %220 = arith.cmpf oeq, %218, %219 : vector<1x128x128xf32>
    %221 = arith.andi %220, %214 : vector<1x128x128xi1>
    %222 = arith.ori %217, %221 : vector<1x128x128xi1>
    %223 = arith.extui %222 : vector<1x128x128xi1> to vector<1x128x128xi32>
    %224 = arith.sitofp %223 : vector<1x128x128xi32> to vector<1x128x128xf32>
    %cst_41 = arith.constant dense<0.000000e+00> : vector<1x128xf32>
    %225 = vector.multi_reduction <add>, %224, %cst_41 [1] : vector<1x128x128xf32> to vector<1x128xf32>
    %226 = vector.shape_cast %225 : vector<1x128xf32> to vector<1x1x128xf32>
    %cst_42 = arith.constant 3.000000e+00 : f32
    %227 = vector.broadcast %cst_42 : f32 to vector<1x1x1xf32>
    %228 = arith.mulf %227, %197 : vector<1x1x1xf32>
    %229 = vector.broadcast %228 : vector<1x1x1xf32> to vector<1x1x128xf32>
    %230 = arith.cmpf olt, %226, %229 : vector<1x1x128xf32>
    %231 = arith.extui %230 : vector<1x1x128xi1> to vector<1x1x128xi32>
    %232 = arith.sitofp %231 : vector<1x1x128xi32> to vector<1x1x128xf32>
    %233 = arith.mulf %206, %232 : vector<1x1x128xf32>
    %234 = vector.shape_cast %233 : vector<1x1x128xf32> to vector<1x1x1x128xf32>
    %cst_43 = arith.constant dense<0.000000e+00> : vector<1xf32>
    %235 = vector.multi_reduction <add>, %234, %cst_43 [1, 2, 3] : vector<1x1x1x128xf32> to vector<1xf32>
    %236 = vector.shape_cast %235 : vector<1xf32> to vector<1x1x1x1xf32>
    %237 = vector.extract %236[0, 0, 0, 0] : f32 from vector<1x1x1x1xf32>
    %238 = vector.broadcast %237 : f32 to vector<1x1x1xf32>
    %239 = tpu.iota {dimensions = array<i32: 1>} : vector<1x8x128xi32>
    %c0_i32_44 = arith.constant 0 : i32
    %240 = vector.broadcast %c0_i32_44 : i32 to vector<1x8x128xi32>
    %241 = arith.cmpi eq, %239, %240 : vector<1x8x128xi32>
    %cst_45 = arith.constant 0.000000e+00 : f32
    %242 = vector.shape_cast %195 : vector<1x1x1xf32> to vector<1x1x1xf32>
    %243 = vector.broadcast %242 : vector<1x1x1xf32> to vector<1x8x128xf32>
    %244 = vector.broadcast %cst_45 : f32 to vector<1x8x128xf32>
    %245 = arith.select %241, %243, %244 : vector<1x8x128xi1>, vector<1x8x128xf32>
    %c1_i32 = arith.constant 1 : i32
    %246 = vector.broadcast %c1_i32 : i32 to vector<1x8x128xi32>
    %247 = arith.cmpi eq, %239, %246 : vector<1x8x128xi32>
    %cst_46 = arith.constant 0.000000e+00 : f32
    %248 = vector.shape_cast %238 : vector<1x1x1xf32> to vector<1x1x1xf32>
    %249 = vector.broadcast %248 : vector<1x1x1xf32> to vector<1x8x128xf32>
    %250 = vector.broadcast %cst_46 : f32 to vector<1x8x128xf32>
    %251 = arith.select %247, %249, %250 : vector<1x8x128xi1>, vector<1x8x128xf32>
    %252 = arith.addf %245, %251 : vector<1x8x128xf32>
    %c2_i32 = arith.constant 2 : i32
    %253 = vector.broadcast %c2_i32 : i32 to vector<1x8x128xi32>
    %254 = arith.cmpi eq, %239, %253 : vector<1x8x128xi32>
    %cst_47 = arith.constant 0.000000e+00 : f32
    %255 = vector.shape_cast %202 : vector<1x1x1xf32> to vector<1x1x1xf32>
    %256 = vector.broadcast %255 : vector<1x1x1xf32> to vector<1x8x128xf32>
    %257 = vector.broadcast %cst_47 : f32 to vector<1x8x128xf32>
    %258 = arith.select %254, %256, %257 : vector<1x8x128xi1>, vector<1x8x128xf32>
    %259 = arith.addf %252, %258 : vector<1x8x128xf32>
    %c3_i32 = arith.constant 3 : i32
    %260 = vector.broadcast %c3_i32 : i32 to vector<1x8x128xi32>
    %261 = arith.cmpi eq, %239, %260 : vector<1x8x128xi32>
    %cst_48 = arith.constant 0.000000e+00 : f32
    %262 = vector.shape_cast %170 : vector<1x1x1xf32> to vector<1x1x1xf32>
    %263 = vector.broadcast %262 : vector<1x1x1xf32> to vector<1x8x128xf32>
    %264 = vector.broadcast %cst_48 : f32 to vector<1x8x128xf32>
    %265 = arith.select %261, %263, %264 : vector<1x8x128xi1>, vector<1x8x128xf32>
    %266 = arith.addf %259, %265 : vector<1x8x128xf32>
    %c0_49 = arith.constant 0 : index
    %c0_50 = arith.constant 0 : index
    %c0_51 = arith.constant 0 : index
    %267 = vector.load %arg5[%c0_49, %c0_50, %c0_51] : memref<1x8x128xf32, #tpu.memory_space<vmem>>, vector<1x8x128xf32>
    tpu.vector_store %arg5[%c0_49, %c0_50, %c0_51], %266 {strides = array<i32>} : memref<1x8x128xf32, #tpu.memory_space<vmem>>, vector<1x8x128xf32>,
    return
  }
  func.func @transform_0(%arg0: i32) -> (i32, i32) {
    %c0_i32 = arith.constant 0 : i32
    %c0_i32_0 = arith.constant 0 : i32
    %c0_i32_1 = arith.constant 0 : i32
    return %c0_i32, %c0_i32_0 : i32, i32
  }
  func.func @transform_1(%arg0: i32) -> (i32, i32, i32) {
    %c0_i32 = arith.constant 0 : i32
    %c0_i32_0 = arith.constant 0 : i32
    %c0_i32_1 = arith.constant 0 : i32
    return %arg0, %c0_i32, %c0_i32_0 : i32, i32, i32
  }
  func.func @transform_2(%arg0: i32) -> (i32, i32, i32) {
    %c0_i32 = arith.constant 0 : i32
    %c0_i32_0 = arith.constant 0 : i32
    %c0_i32_1 = arith.constant 0 : i32
    return %arg0, %c0_i32, %c0_i32_0 : i32, i32, i32
  }
  func.func @transform_3(%arg0: i32) -> (i32, i32, i32) {
    %c0_i32 = arith.constant 0 : i32
    %c0_i32_0 = arith.constant 0 : i32
    %c0_i32_1 = arith.constant 0 : i32
    return %arg0, %c0_i32, %c0_i32_0 : i32, i32, i32
  }
  func.func @transform_4(%arg0: i32) -> (i32, i32, i32) {
    %c0_i32 = arith.constant 0 : i32
    %c0_i32_0 = arith.constant 0 : i32
    %c0_i32_1 = arith.constant 0 : i32
    return %arg0, %c0_i32, %c0_i32_0 : i32, i32, i32
  }
}

</mosaic_0001>

<bundles_post_ra>
// kernel: tpu_custom_call.1
= control target key start
LH: loop header
LB: loop body
LE: loop exit
PB: predicated region body
PF: predicated region fallthrough
CT: control target
= control target key end

     0   :  { %9 = vsyncpa [#allocation3], 0  ;;  %s1739_s0 = inlined_call_operand.vmem [shape: f32[8,128], index: 0, kind: input, shape index: {}]   ;;  %s1740_s1 = inlined_call_operand.vmem [shape: f32[2,8,8], index: 1, kind: input, shape index: {}]   ;;  %s1741_s2 = inlined_call_operand.vmem [shape: f32[2,128,4], index: 2, kind: input, shape index: {}]   ;;  %s1742_s3 = inlined_call_operand.vmem [shape: f32[2,128,16], index: 3, kind: input, shape index: {}]   ;;  %s1743_s4 = inlined_call_operand.hbm [shape: f32[2,8,128], index: 4, kind: output, shape index: {}]  }
   0x1   :  { %11 = vsyncpa [#allocation3 + $0x1], 0  ;;  %s1247_s15 = smov 0   ;;  %s1249_s16 = smov 0  }
   0x2   :  { %s1251_s17 = smov 0   ;;  %s1253_s18 = smov 0  }
   0x3 LB: > { %s1268_s19 = sadd.s32 4294967295, %s1210_s18   ;;  %s1029_s20 = sadd.s32 4294967294, %s1210_s18   ;;  %s1210_s18 = sphi %s1253_s18, %s1774_s18   ;;  %s1206_s17 = sphi %s1251_s17, %s1773_s17   ;;  %s1202_s16 = sphi %s1249_s16, %s1772_s16   ;;  %s1198_s15 = sphi %s1247_s15, %s1771_s15  }
   0x4   : > { %s1272_s21 = sadd.s32 1, %s1210_s18   ;;  %s123_s22 = sadd.s32 1, %s1206_s17 }
   0x5   : > { %s120_s23 = ssub.s32 %s1210_s18, %s1272_s21  ;;  %p133_p0 = scmp.ne.s32.totalorder %s1206_s17, %s1202_s16 }
   0x6   : > { %p121_p1 = scmp.eq.s32.totalorder %s120_s23, 0  ;;  %p134_p2 = scmp.eq.s32.totalorder %s1268_s19, 1 }
   0x7   : > { %p139_p3 = scmp.ne.s32.totalorder %s1202_s16, %s1198_s15  ;;  %p140_p4 = scmp.eq.s32.totalorder %s1029_s20, 1 }
   0x8   : > { %s1283_s24 = scalar_select %p121_p1, %s1206_s17, %s123_s22  }
   0x9   : > { %p1285_p5 = por %p134_p2, %p133_p0  ;;  %p1289_p6 = por %p140_p4, %p139_p3 }
   0xa   : > { %p1032_p7 = scmp.ge.s32.totalorder %s1210_s18, 1  ;;  %p184_p8 = scmp.lt.s32.totalorder %s1210_s18, 3 }
   0xc   : > { %p185_p9 = pnand %p1032_p7, %p184_p8 }
   0xd   : > { %p219_p10 = scmp.lt.s32.totalorder (!%p185_p9), %s1268_s19, 1  ;;  %v1212_v0 = vmov (!%p185_p9), 2   ;;  %v1213_v1 = vmov (!%p185_p9), 3   ;;  %s1214_s6 = smov (!%p185_p9), 2   ;;  %v1215_v3 = vmov (!%p185_p9), 0   ;;  %v1216_v4 = vmov (!%p185_p9), 1  }
   0xe   : > { %188 = sbr.rel (%p185_p9) target bundleno = 1507 (0x5e3), region = 36  ;;  %1122 = vset.pattern.permute.xlu1 (!%p185_p9), %v1212_v0  ;;  %1124 = vset.pattern.permute.xlu0 (!%p185_p9), %v1213_v1  ;;  %s1217_s7 = smov (!%p185_p9), 127   ;;  %v240_v9 = vlaneseq (!%p185_p9)  ;;  %v1323_v12 = vld [vmem:[%s1739_s0] sm:$0xff] (!%p185_p9)  ;;  %v1218_v43 = vmov (!%p185_p9), 4  }
   0xf   : > { %v287_v18 = vrot.slane (!%p185_p9), %v1323_v12, 6  ;;  %s1219_s10 = smov (!%p185_p9), 126  }
  0x10   : > { %v1318_v11 = vshrl.u32 (!%p185_p9), %v240_v9, 7  ;;  %v1340_v44 = vand.u32 (!%p185_p9), 127, %v240_v9 }
  0x11   : > { %v289_v23 = vsub.f32 (!%p185_p9), %v1323_v12, %v287_v18 }
  0x12   : > { %v242_v13 = vsub.s32 (!%p185_p9), 2, %v1318_v11  ;;  %v251_v15 = vsub.s32 (!%p185_p9), 0, %v1318_v11  ;;  %v271_v16 = vsub.s32 (!%p185_p9), 1, %v1318_v11  ;;  %v262_v17 = vsub.s32 (!%p185_p9), 3, %v1318_v11 }
  0x13   : > { %v291_v30 = vrot.slane (!%p185_p9), %v289_v23, 1 }
  0x14   : > { %v243_v19 = vrot.slane (!%p185_p9), %v1323_v12, %v242_v13  ;;  %v252_v20 = vrot.slane (!%p185_p9), %v1323_v12, %v251_v15  ;;  %v272_v21 = vrot.slane (!%p185_p9), %v1323_v12, %v271_v16  ;;  %v263_v22 = vrot.slane (!%p185_p9), %v1323_v12, %v262_v17 }
  0x15   : > { %s1298_s27 = scalar_select %p219_p10, %s1268_s19, 1  ;;  %v293_v33 = vmul.f32 %v291_v30, %v289_v23 }
  0x17   : > { %s1034_s28 = sshll.u32 %s1298_s27, 3  ;;  %v302_v36 = vrot.slane %v293_v33, %v242_v13  ;;  %s1062_s11 = sshll.u32 %s1298_s27, 7 }
  0x18   : > { %s222_s5 = scalar_lea.vmem %s1740_s1, %s1034_s28  ;;  %s1350_s14 = scalar_lea.vmem %s1742_s3, %s1062_s11 }
  0x19   : > { %v1304_v2 = vld [vmem:[%s222_s5] sm:$0xff]  ;;  %v497_v50 = vld [vmem:[%s1350_s14 + $0x8] sm:$0xff]  ;;  %v498_v51 = vld [vmem:[%s1350_s14 + $0x10] sm:$0xff]  ;;  %s1425_s23 = scalar_lea.vmem %s1741_s2, %s1062_s11  ;;  %s216_s28 = sand.u32 1, %s1202_s16  }
  0x1a   : > { %277 = vrot.lane.b32.xlu0 %v1304_v2, %s1214_s6  ;;  %237 = vperm.xlu1 %1122, %v1304_v2   ;;  %v496_v49 = vld [vmem:[%s1350_s14] sm:$0xff]  ;;  %v499_v52 = vld [vmem:[%s1350_s14 + $0x18] sm:$0xff]  ;;  %v501_v54 = vld [vmem:[%s1350_s14 + $0x28] sm:$0xff]  ;;  %s1033_s5 = sshll.u32 %s216_s28, 3  ;;  %s933_s13 = scalar_lea.sflag [#allocation3], %s216_s28 }
  0x1b   : > { %v500_v53 = vld [vmem:[%s1350_s14 + $0x20] sm:$0xff]  ;;  %v502_v55 = vld [vmem:[%s1350_s14 + $0x30] sm:$0xff]  ;;  %v503_v56 = vld [vmem:[%s1350_s14 + $0x38] sm:$0xff]  ;;  %s218_s8 = scalar_lea.vmem [#allocation2], %s1033_s5 }
  0x1c   : > { %v504_v57 = vld [vmem:[%s1350_s14 + $0x40] sm:$0xff]  ;;  %v505_v58 = vld [vmem:[%s1350_s14 + $0x48] sm:$0xff]  ;;  %v506_v59 = vld [vmem:[%s1350_s14 + $0x50] sm:$0xff]  ;;  %s946_s9 = sshll.u32 %s218_s8, 4  ;;  %s1699_s9 = int_to_ptr.vmem [resolvable:$true] %s946_s9 }
  0x1d   : > { %v507_v60 = vld [vmem:[%s1350_s14 + $0x58] sm:$0xff]  ;;  %v508_v61 = vld [vmem:[%s1350_s14 + $0x60] sm:$0xff]  ;;  %v509_v62 = vld [vmem:[%s1350_s14 + $0x68] sm:$0xff] }
  0x1e   : > { %1123 = vset.pattern.permute.xlu1 %v1215_v3  ;;  %v510_v63 = vld [vmem:[%s1350_s14 + $0x70] sm:$0xff] }
  0x1f   : > { %246 = vperm.xlu1 %1123, %v1304_v2  }
  0x23   : > { %1125 = vset.pattern.permute.xlu1 %v1216_v4 }
  0x24   : > { %266 = vperm.xlu1 %1125, %v1304_v2  }
  0x28   : > { %1126 = vset.pattern.permute.xlu1 %v1212_v0  ;;  %v511_v0 = vld [vmem:[%s1350_s14 + $0x78] sm:$0xff]  ;;  %s1148_s14 = scalar_lea.vmem %s1699_s9, 128 }
  0x29   : > { %p1149_p11 = scmp.ne.s32.totalorder %s1699_s9, %s1148_s14 }
  0x2b   : > { %p1150_p12 = pnand %p1149_p11, %p1285_p5 }
  0x2d   : > { %p1151_p13 = pneg %p1150_p12 }
  0x8c   : > { %v278_v5 = vpop.permute.xlu0 %277 }
  0x8d   : > { %v1313_v6 = vsub.f32 %v1304_v2, %v278_v5 }
  0x8f   : > { %282 = vrot.lane.b32.xlu0 %v1313_v6, %s1217_s7  ;;  %s1059_s7 = sshll.u32 %s1268_s19, 7  ;;  %s1221_s19 = smov [#allocation2]  }
  0x90   : > { %s1697_s12 = scalar_lea.hbm %s1743_s4, %s1059_s7  ;;  %s1152_s20 = sshll.u32 %s1221_s19, 4  ;;  %s1153_s20 = int_to_ptr.vmem [resolvable:$false] %s1152_s20 }
  0x91   : > { %s1154_s22 = scalar_lea.vmem %s1153_s20, 256  ;;  %p1155_p0 = scmp.lt.s32.totalorder %s1699_s9, %s1153_s20 }
  0x92   : > { %p1156_p1 = scmp.lt.s32.totalorder %s1154_s22, %s1148_s14 }
  0x93   : > { %257 = vperm.xlu0 %1124, %v1304_v2  }
  0x94   : > { %p1157_p2 = por %p1156_p1, %p1155_p0 }
  0x96   : > { %p1158_p3 = pnand %p1157_p2, %p1151_p13 }
  0x97   : > { %1127 = vset.pattern.permute.xlu0 %v1218_v43 }
  0x99   : > { %v238_v10 = vpop.permute.xlu1 %237 }
  0x9a   : > { %v244_v26 = vmin.f32 %v238_v10, %v243_v19 }
  0x9e   : > { %v247_v14 = vpop.permute.xlu1 %246 }
  0x9f   : > { %v253_v27 = vmax.f32 %v247_v14, %v252_v20 }
  0xa1   : > { %v254_v31 = vsub.f32 %v244_v26, %v253_v27 }
  0xa3   : > { %v267_v24 = vpop.permute.xlu1 %266  ;;  %v255_v34 = vmax.f32 %v254_v31, 0.0 }
  0xa4   : > { %v273_v28 = vmax.f32 %v267_v24, %v272_v21 }
 0x101   : > { %v283_v7 = vpop.permute.xlu0 %282 }
 0x102   : > { %v285_v8 = vmul.f32 %v283_v7, %v1313_v6 }
 0x104   : > { %296 = vperm.xlu1 %1126, %v285_v8  }
 0x112   : > { %v258_v25 = vpop.permute.xlu0 %257 }
 0x113   : > { %v264_v29 = vmin.f32 %v258_v25, %v263_v22 }
 0x115   : > { %v274_v32 = vsub.f32 %v264_v29, %v273_v28 }
 0x117   : > { %v275_v35 = vmax.f32 %v274_v32, 0.0 }
 0x119   : > { %v276_v38 = vmul.f32 %v275_v35, %v255_v34 }
 0x183   : > { %v297_v37 = vpop.permute.xlu1 %296 }
 0x184   : > { %v303_v39 = vadd.f32 %v302_v36, %v297_v37 }
 0x186   : > { %v304_v40 = vsub.f32 %v303_v39, %v276_v38 }
 0x188   : > { %1132 = vrcp.f32 %v304_v40 }
 0x192   : > { %v1133_v41 = vpop.eup %1132 }
 0x193   : > { %v1335_v42 = vmul.f32 %v1133_v41, %v276_v38 }
 0x195   : > { %328 = vmax.xlane.f32.xlu0 %v1335_v42 }
 0x1ab   : > { %364 = vperm.xlu0 %1127, %v1304_v2  }
 0x1af   : > { %379 = vrot.lane.b32.xlu0 %v1304_v2, %s1219_s10 }
 0x222   : > { %v329_v45 = vpop.xlane.xlu0 %328 }
 0x223   : > { %vm330_vm0 = vcmp.ge.f32.partialorder %v1335_v42, %v329_v45 }
 0x224   : > { %v331_v46 = vsel %vm330_vm0, %v1340_v44, 128 }
 0x225   : > { %v333_v47 = vshra.s32 %v331_v46, 16  ;;  %v332_v7 = vand.u32 65535, %v331_v46 }
 0x227   : > { %v335_v48 = vcvt.s32.f32 %v333_v47  ;;  %v334_v10 = vcvt.s32.f32 %v332_v7 }
 0x229   : > { %336 = vmin.xlane.f32.xlu1 %v335_v48 }
 0x22a   : > { %v1368_v5 = vpop.permute.xlu0 %364 }
 0x22e   : > { %v380_v8 = vpop.permute.xlu0 %379 }
 0x22f   : > { %v382_v14 = vadd.f32 %v380_v8, %v1304_v2  ;;  %v311_v2 = vrot.slane %v1335_v42, 4 }
 0x231   : > { %v383_v15 = vmul.f32 0.5, %v382_v14 }
 0x25c   : > { %512 = vxpose.xlu1.b32.start [1/16] (narrow) %v496_v49, 16 }
 0x260   : > { %513 = vxpose.xlu1.b32.cont [2/16] (narrow) %v497_v50, 16 }
 0x264   : > { %514 = vxpose.xlu1.b32.cont [3/16] (narrow) %v498_v51, 16 }
 0x268   : > { %515 = vxpose.xlu1.b32.cont [4/16] (narrow) %v499_v52, 16 }
 0x26c   : > { %516 = vxpose.xlu1.b32.cont [5/16] (narrow) %v500_v53, 16 }
 0x270   : > { %517 = vxpose.xlu1.b32.cont [6/16] (narrow) %v501_v54, 16 }
 0x274   : > { %518 = vxpose.xlu1.b32.cont [7/16] (narrow) %v502_v55, 16 }
 0x278   : > { %519 = vxpose.xlu1.b32.cont [8/16] (narrow) %v503_v56, 16 }
 0x27c   : > { %520 = vxpose.xlu1.b32.cont [9/16] (narrow) %v504_v57, 16  ;;  %v1220_v57 = vmov 0.0  }
 0x280   : > { %521 = vxpose.xlu1.b32.cont [10/16] (narrow) %v505_v58, 16 }
 0x284   : > { %522 = vxpose.xlu1.b32.cont [11/16] (narrow) %v506_v59, 16 }
 0x288   : > { %523 = vxpose.xlu1.b32.cont [12/16] (narrow) %v507_v60, 16 }
 0x28c   : > { %524 = vxpose.xlu1.b32.cont [13/16] (narrow) %v508_v61, 16 }
 0x290   : > { %525 = vxpose.xlu1.b32.cont [14/16] (narrow) %v509_v62, 16 }
 0x294   : > { %526 = vxpose.xlu1.b32.cont [15/16] (narrow) %v510_v63, 16 }
 0x298   : > { %527 = vxpose.xlu1.b32.end [16/16] (narrow) %v511_v0, 16 }
 0x2b6   : > { %408 = vperm.xlu1 %1126, %v1313_v6   ;;  %v337_v9 = vpop.xlane.xlu1 %336 }
 0x2b7   : > { %vm338_vm1 = vcmp.eq.f32.partialorder %v335_v48, %v337_v9  ;;  %v343_v33 = vcvt.f32.s32 %v337_v9 }
 0x2b8   : > { %v339_v13 = vsel %vm338_vm1, %v334_v10, inf  ;;  %vm688_vm1 = vcmp.lt.s32.totalorder %v1318_v11, %v1340_v44 }
 0x2b9   : > { %340 = vmin.xlane.f32.xlu0 %v339_v13  ;;  %v344_v36 = vshll.u32 %v343_v33, 16 }
 0x2ba   : > { %1128 = vset.pattern.permute.xlu1 %v1213_v1  ;;  %v312_v1 = vmax.f32 %v1335_v42, %v311_v2 }
 0x2bb   : > { %419 = vperm.xlu1 %1128, %v1313_v6  }
 0x2bc   : > { %v313_v20 = vrot.slane %v312_v1, 2 }
 0x2bf   : > { %1129 = vset.pattern.permute.xlu1 %v1216_v4  ;;  %v314_v4 = vmax.f32 %v312_v1, %v313_v20 }
 0x2c0   : > { %397 = vperm.xlu1 %1129, %v383_v15  }
 0x2c1   : > { %v315_v23 = vrot.slane %v314_v4, 1 }
 0x2c3   : > { %v316_v25 = vmax.f32 %v314_v4, %v315_v23 }
 0x2c4   : > { %1130 = vset.pattern.permute.xlu1 %v1215_v3 }
 0x2c5   : > { %386 = vperm.xlu1 %1130, %v383_v15   ;;  %vm317_vm2 = vcmp.ge.f32.partialorder %v1335_v42, %v316_v25 }
 0x2c6   : > { %v318_v28 = vsel %vm317_vm2, %v1318_v11, 8 }
 0x2c7   : > { %v319_v30 = vrot.slane %v318_v28, 4 }
 0x2c9   : > { %vm320_vm3 = vcmp.lt.s32.totalorder %v318_v28, %v319_v30 }
 0x2ca   : > { %v321_v34 = vsel %vm320_vm3, %v318_v28, %v319_v30 }
 0x2cb   : > { %v322_v38 = vrot.slane %v321_v34, 2 }
 0x2cd   : > { %vm323_vm5 = vcmp.lt.s32.totalorder %v321_v34, %v322_v38 }
 0x2ce   : > { %v324_v45 = vsel %vm323_vm5, %v321_v34, %v322_v38 }
 0x2cf   : > { %v325_v49 = vrot.slane %v324_v45, 1 }
 0x2d1   : > { %vm326_vm8 = vcmp.lt.s32.totalorder %v324_v45, %v325_v49 }
 0x2d2   : > { %v327_v55 = vsel %vm326_vm8, %v324_v45, %v325_v49  ;;  %v448_v45 = vld [vmem:[%s1425_s23] sm:$0xff] }
 0x2d3   : > { %v452_v49 = vld [vmem:[%s1425_s23 + $0x20] sm:$0xff] }
 0x2dc   : > { %v1376_v16 = vpop.trf.xlu1 }
 0x2e0   : > { %v1378_v17 = vpop.trf.xlu1 }
 0x2e1   : > { %v592_v18 = vmax.f32 %v1376_v16, %v1378_v17 }
 0x2e3   : > { %v593_v19 = vrot.slane %v592_v18, 4 }
 0x2e5   : > { %v594_v6 = vmax.f32 %v592_v18, %v593_v19  ;;  %v1401_v18 = vadd.s32 8, %v1318_v11 }
 0x2e7   : > { %v595_v21 = vrot.slane %v594_v6, 2  ;;  %vm689_vm3 = vcmp.lt.s32.totalorder %v1401_v18, %v1340_v44 }
 0x2e9   : > { %v596_v22 = vmax.f32 %v594_v6, %v595_v21 }
 0x2eb   : > { %v597_v24 = vrot.slane %v596_v22, 1 }
 0x2ed   : > { %v1384_v26 = vmax.f32 %v596_v22, %v597_v24 }
 0x2ef   : > { %v599_v27 = vsub.f32 %v1376_v16, %v1384_v26  ;;  %v600_v29 = vsub.f32 %v1378_v17, %v1384_v26 }
 0x2f1   : > { %v601_v31 = vmul.f32 1.442695, %v599_v27  ;;  %v603_v32 = vmul.f32 1.442695, %v600_v29 }
 0x2f3   : > { %1134 = vpow2.f32 %v601_v31 }
 0x2f4   : > { %1136 = vpow2.f32 %v603_v32 }
 0x2fd   : > { %v1135_v41 = vpop.eup %1134 }
 0x2fe   : > { %v1137_v43 = vpop.eup %1136 }
 0x2ff   : > { %v605_v47 = vadd.f32 %v1137_v43, %v1135_v41 }
 0x301   : > { %v606_v51 = vrot.slane %v605_v47, 4 }
 0x303   : > { %v607_v54 = vadd.f32 %v606_v51, %v605_v47  ;;  %v450_v47 = vld [vmem:[%s1425_s23 + $0x10] sm:$0xff] }
 0x304   : > { %v454_v51 = vld [vmem:[%s1425_s23 + $0x30] sm:$0xff] }
 0x305   : > { %v608_v59 = vrot.slane %v607_v54, 2 }
 0x307   : > { %v609_v62 = vadd.f32 %v608_v59, %v607_v54  ;;  %v456_v54 = vld [vmem:[%s1425_s23 + $0x40] sm:$0xff] }
 0x309   : > { %v610_v7 = vrot.slane %v609_v62, 1 }
 0x30b   : > { %v611_v13 = vadd.f32 %v610_v7, %v609_v62  ;;  %v459_v62 = vld [vmem:[%s1425_s23 + $0x58] sm:$0xff]  ;;  %v461_v7 = vld [vmem:[%s1425_s23 + $0x68] sm:$0xff] }
 0x30d   : > { %1138 = vlog2.f32 %v611_v13  ;;  %v463_v13 = vld [vmem:[%s1425_s23 + $0x78] sm:$0xff] }
 0x30e   : > { %1140 = vrcp.f32 %v1323_v12 }
 0x317   : > { %v1139_v4 = vpop.eup %1138 }
 0x318   : > { %v622_v23 = vmul.f32 0.6931472, %v1139_v4  ;;  %v676_v4 = vadd.s32 32, %v1318_v11 }
 0x31a   : > { %v623_v27 = vadd.f32 %v622_v23, %v1384_v26  ;;  %v677_v23 = vadd.s32 40, %v1318_v11 }
 0x346   : > { %v341_v35 = vpop.xlane.xlu0 %340 }
 0x347   : > { %v342_v37 = vcvt.f32.s32 %v341_v35 }
 0x349   : > { %v345_v39 = vadd.s32 %v344_v36, %v342_v37 }
 0x34b   : > { %vm346_vm4 = vcmp.eq.s32.totalorder %v1340_v44, %v345_v39 }
 0x34c   : > { %v347_v40 = vsel %vm346_vm4, %v1318_v11, 4294967295 }
 0x34d   : > { %v348_v42 = vrot.slane %v347_v40, 4 }
 0x34f   : > { %vm349_vm6 = vcmp.gt.s32.totalorder %v347_v40, %v348_v42 }
 0x350   : > { %v350_v46 = vsel %vm349_vm6, %v347_v40, %v348_v42 }
 0x351   : > { %v351_v48 = vrot.slane %v350_v46, 2 }
 0x353   : > { %vm352_vm7 = vcmp.gt.s32.totalorder %v350_v46, %v351_v48 }
 0x354   : > { %v353_v50 = vsel %vm352_vm7, %v350_v46, %v351_v48  ;;  %v449_v46 = vld [vmem:[%s1425_s23 + $0x8] sm:$0xff]  ;;  %v451_v48 = vld [vmem:[%s1425_s23 + $0x18] sm:$0xff] }
 0x355   : > { %v354_v52 = vrot.slane %v353_v50, 1 }
 0x357   : > { %vm355_vm9 = vcmp.gt.s32.totalorder %v353_v50, %v354_v52 }
 0x358   : > { %v356_v53 = vsel %vm355_vm9, %v353_v50, %v354_v52  ;;  %v453_v50 = vld [vmem:[%s1425_s23 + $0x28] sm:$0xff]  ;;  %v409_v52 = vpop.permute.xlu1 %408 }
 0x359   : > { %vm357_vm10 = vcmp.ge.s32.totalorder %v356_v53, 0 }
 0x35a   : > { %v358_v56 = vsel %vm357_vm10, %v356_v53, %v327_v55  ;;  %v359_v9 = vsel %vm357_vm10, 1.0, %v316_v25  ;;  %v455_v53 = vld [vmem:[%s1425_s23 + $0x38] sm:$0xff] }
 0x35b   : > { %vm360_vm11 = vcmp.eq.s32.totalorder %v1318_v11, %v358_v56  ;;  %vm374_vm12 = vcmp.lt.f32.partialorder %v359_v9, 0.5  ;;  %v457_v56 = vld [vmem:[%s1425_s23 + $0x48] sm:$0xff]  ;;  %v462_v9 = vld [vmem:[%s1425_s23 + $0x70] sm:$0xff] }
 0x35c   : > { %v1396_v58 = vsel %vm360_vm11, 1.0, %v1220_v57  ;;  %v420_v55 = vpop.permute.xlu1 %419 }
 0x35d   : > { %v367_v60 = vmul.f32 %v1396_v58, %v1368_v5 }
 0x35f   : > { %v368_v61 = vrot.slane %v367_v60, 4 }
 0x360   : > { %v1437_v59 = vpop.permute.xlu1 %397 }
 0x361   : > { %v369_v63 = vadd.f32 %v368_v61, %v367_v60  ;;  %v458_v60 = vld [vmem:[%s1425_s23 + $0x50] sm:$0xff] }
 0x363   : > { %v370_v0 = vrot.slane %v369_v63, 2 }
 0x364   : > { %v1440_v61 = vpop.permute.xlu1 %386 }
 0x365   : > { %v371_v8 = vadd.f32 %v370_v0, %v369_v63  ;;  %v460_v0 = vld [vmem:[%s1425_s23 + $0x60] sm:$0xff] }
 0x367   : > { %v372_v10 = vrot.slane %v371_v8, 1 }
 0x369   : > { %v373_v14 = vadd.f32 %v372_v10, %v371_v8 }
 0x36b   : > { %v375_v15 = vsel %vm374_vm12, 0.0, %v373_v14 }
 0x36c   : > { %v1066_v2 = vtrunc.f32 %v375_v15  ;;  %vm376_vm15 = vcmp.ne.f32.partialorder %v375_v15, 0.0 }
 0x36d   : > { %v1409_v28 = vsel %vm376_vm15, 1.0, %v1220_v57 }
 0x36e   : > { %v1067_v19 = vcvt.f32.s32 %v1066_v2  ;;  %vm640_vm0 = vcmp.gt.f32.partialorder %v1409_v28, 0.0 }
 0x370   : > { %vm590_vm13 = vcmp.eq.s32.totalorder %v1318_v11, %v1067_v19  ;;  %vm591_vm14 = vcmp.eq.s32.totalorder %v1401_v18, %v1067_v19  ;;  %v411_v19 = vmul.f32 %v1396_v58, %v409_v52  ;;  %v1746_v18 = vmov 0 }
 0x371   : > { %v612_v5 = vsel %vm590_vm13, %v1376_v16, 0.0  ;;  %v613_v1 = vsel %vm591_vm14, %v1378_v17, 0.0 }
 0x372   : > { %v614_v6 = vadd.f32 %v613_v1, %v612_v5  ;;  %v674_v5 = vadd.s32 16, %v1318_v11  ;;  %v422_v1 = vmul.f32 %v1396_v58, %v420_v55 }
 0x374   : > { %v615_v20 = vrot.slane %v614_v6, 4  ;;  %vm690_vm7 = vcmp.lt.s32.totalorder %v674_v5, %v1340_v44 }
 0x376   : > { %v616_v21 = vadd.f32 %v615_v20, %v614_v6  ;;  %v675_v20 = vadd.s32 24, %v1318_v11 }
 0x378   : > { %v617_v22 = vrot.slane %v616_v21, 2  ;;  %vm691_vm12 = vcmp.lt.s32.totalorder %v675_v20, %v1340_v44 }
 0x37a   : > { %v618_v24 = vadd.f32 %v617_v22, %v616_v21  ;;  %v412_v21 = vrot.slane %v411_v19, 4  ;;  %v423_v22 = vrot.slane %v422_v1, 4 }
 0x37c   : > { %v619_v25 = vrot.slane %v618_v24, 1 }
 0x37e   : > { %v620_v29 = vadd.f32 %v619_v25, %v618_v24  ;;  %v413_v24 = vadd.f32 %v412_v21, %v411_v19  ;;  %v685_v19 = vadd.s32 104, %v1318_v11 }
 0x380   : > { %v1411_v30 = vsub.f32 %v623_v27, %v620_v29  ;;  %v678_v27 = vadd.s32 48, %v1318_v11  ;;  %v424_v29 = vadd.f32 %v423_v22, %v422_v1  ;;  %v686_v22 = vadd.s32 112, %v1318_v11 }
 0x382   : > { %v1415_v16 = vsel %vm640_vm0, 0.0, %v1411_v30 }
 0x383   : > { %642 = vxpose.xlu0.b32.start.end [1/1] (short) %v1415_v16, 128 }
 0x3ac   : > { %1131 = vset.pattern.permute.xlu0 %v1215_v3 }
 0x403   : > { %v658_v17 = vpop.trf.xlu0 }
 0x404   : > { %706 = vperm.xlu0 %1131, %v658_v17   ;;  %v679_v17 = vadd.s32 56, %v1318_v11 }
 0x407   : > { %v659_v31 = vpop.trf.xlu0 }
 0x408   : > { %711 = vperm.xlu1 %1130, %v659_v31  }
 0x40b   : > { %v660_v26 = vpop.trf.xlu0 }
 0x40c   : > { %716 = vperm.xlu1 %1130, %v660_v26  }
 0x40f   : > { %v661_v32 = vpop.trf.xlu0 }
 0x410   : > { %721 = vperm.xlu1 %1130, %v661_v32  }
 0x413   : > { %v662_v33 = vpop.trf.xlu0 }
 0x414   : > { %726 = vperm.xlu1 %1130, %v662_v33   ;;  %v414_v33 = vrot.slane %v413_v24, 2 }
 0x417   : > { %v663_v34 = vpop.trf.xlu0 }
 0x418   : > { %731 = vperm.xlu1 %1130, %v663_v34  }
 0x41b   : > { %v664_v35 = vpop.trf.xlu0 }
 0x41c   : > { %736 = vperm.xlu1 %1130, %v664_v35   ;;  %v680_v35 = vadd.s32 64, %v1318_v11 }
 0x41f   : > { %v665_v36 = vpop.trf.xlu0 }
 0x420   : > { %741 = vperm.xlu1 %1130, %v665_v36  }
 0x423   : > { %v666_v37 = vpop.trf.xlu0 }
 0x424   : > { %746 = vperm.xlu1 %1130, %v666_v37  }
 0x427   : > { %v667_v3 = vpop.trf.xlu0 }
 0x428   : > { %751 = vperm.xlu0 %1131, %v667_v3  }
 0x42b   : > { %v668_v38 = vpop.trf.xlu0 }
 0x42c   : > { %756 = vperm.xlu0 %1131, %v668_v38   ;;  %v425_v38 = vrot.slane %v424_v29, 2 }
 0x42e   : > { %v426_v52 = vadd.f32 %v425_v38, %v424_v29  ;;  %v687_v29 = vadd.s32 120, %v1318_v11 }
 0x42f   : > { %v669_v39 = vpop.trf.xlu0 }
 0x430   : > { %761 = vperm.xlu1 %1130, %v669_v39  }
 0x433   : > { %v670_v40 = vpop.trf.xlu0 }
 0x434   : > { %766 = vperm.xlu0 %1131, %v670_v40   ;;  %v681_v40 = vadd.s32 72, %v1318_v11 }
 0x437   : > { %v671_v41 = vpop.trf.xlu0 }
 0x438   : > { %771 = vperm.xlu1 %1130, %v671_v41   ;;  %v400_v41 = vmul.f32 %v1396_v58, %v1437_v59 }
 0x43a   : > { %v401_v55 = vrot.slane %v400_v41, 4 }
 0x43b   : > { %v672_v42 = vpop.trf.xlu0 }
 0x43c   : > { %776 = vperm.xlu0 %1131, %v672_v42   ;;  %v402_v5 = vadd.f32 %v401_v55, %v400_v41 }
 0x43f   : > { %v673_v43 = vpop.trf.xlu0 }
 0x440   : > { %781 = vperm.xlu1 %1130, %v673_v43   ;;  %v415_v43 = vadd.f32 %v414_v33, %v413_v24 }
 0x45b   : > { %636 = vadd.xlane.f32.xlu0 %v1409_v28 }
 0x469   : > { %464 = vxpose.xlu1.b32.start [1/16] (narrow) %v448_v45, 8 }
 0x46d   : > { %465 = vxpose.xlu1.b32.cont [2/16] (narrow) %v449_v46, 8 }
 0x471   : > { %466 = vxpose.xlu1.b32.cont [3/16] (narrow) %v450_v47, 8  ;;  %v682_v47 = vadd.s32 80, %v1318_v11 }
 0x475   : > { %467 = vxpose.xlu1.b32.cont [4/16] (narrow) %v451_v48, 8  ;;  %v389_v48 = vmul.f32 %v1396_v58, %v1440_v61  ;;  %v416_v61 = vrot.slane %v415_v43, 1 }
 0x477   : > { %v417_v21 = vadd.f32 %v416_v61, %v415_v43 }
 0x479   : > { %468 = vxpose.xlu1.b32.cont [5/16] (narrow) %v452_v49, 8 }
 0x47d   : > { %469 = vxpose.xlu1.b32.cont [6/16] (narrow) %v453_v50, 8 }
 0x481   : > { %470 = vxpose.xlu1.b32.cont [7/16] (narrow) %v454_v51, 8 }
 0x483   : > { %v707_v2 = vpop.permute.xlu0 %706 }
 0x484   : > { %vm800_vm2 = vcmp.eq.f32.partialorder %v707_v2, %v1415_v16  ;;  %vm784_vm5 = vcmp.gt.f32.partialorder %v707_v2, %v1415_v16 }
 0x485   : > { %471 = vxpose.xlu1.b32.cont [8/16] (narrow) %v455_v53, 8  ;;  %vm816_vm6 = vmand %vm800_vm2, %vm688_vm1  ;;  %vm692_vm1 = vcmp.lt.s32.totalorder %v676_v4, %v1340_v44 }
 0x486   : > { %vm1466_vm11 = vmor %vm784_vm5, %vm816_vm6  ;;  %vm693_vm6 = vcmp.lt.s32.totalorder %v677_v23, %v1340_v44 }
 0x487   : > { %v712_v63 = vpop.permute.xlu1 %711  ;;  %v1747_v18 = vsel %vm1466_vm11, 4294967295, %v1746_v18 }
 0x488   : > { %vm801_vm4 = vcmp.eq.f32.partialorder %v712_v63, %v1415_v16  ;;  %vm785_vm9 = vcmp.gt.f32.partialorder %v712_v63, %v1415_v16 }
 0x489   : > { %472 = vxpose.xlu1.b32.cont [9/16] (narrow) %v456_v54, 8  ;;  %vm817_vm10 = vmand %vm801_vm4, %vm689_vm3  ;;  %v683_v54 = vadd.s32 88, %v1318_v11 }
 0x48a   : > { %vm833_vm0 = vmor %vm785_vm9, %vm817_vm10  ;;  %vm694_vm10 = vcmp.lt.s32.totalorder %v678_v27, %v1340_v44 }
 0x48b   : > { %v717_v8 = vpop.permute.xlu1 %716  ;;  %v1042_v31 = vsel %vm833_vm0, 1.0, %v1220_v57 }
 0x48c   : > { %vm802_vm8 = vcmp.eq.f32.partialorder %v717_v8, %v1415_v16  ;;  %vm786_vm14 = vcmp.gt.f32.partialorder %v717_v8, %v1415_v16 }
 0x48d   : > { %473 = vxpose.xlu1.b32.cont [10/16] (narrow) %v457_v56, 8  ;;  %vm818_vm15 = vmand %vm802_vm8, %vm690_vm7 }
 0x48e   : > { %vm834_vm5 = vmor %vm786_vm14, %vm818_vm15 }
 0x48f   : > { %v722_v10 = vpop.permute.xlu1 %721  ;;  %v1043_v37 = vsel %vm834_vm5, 1.0, %v1220_v57  ;;  %vm696_vm5 = vcmp.lt.s32.totalorder %v680_v35, %v1340_v44  ;;  %v403_v35 = vrot.slane %v402_v5, 2 }
 0x490   : > { %vm803_vm13 = vcmp.eq.f32.partialorder %v722_v10, %v1415_v16  ;;  %vm787_vm3 = vcmp.gt.f32.partialorder %v722_v10, %v1415_v16 }
 0x491   : > { %474 = vxpose.xlu1.b32.cont [11/16] (narrow) %v458_v60, 8  ;;  %vm819_vm4 = vmand %vm803_vm13, %vm691_vm12  ;;  %vm1752_vm13 = vnez %v1747_v18 }
 0x492   : > { %vm1490_vm9 = vmor %vm787_vm3, %vm819_vm4  ;;  %v1041_v36 = vsel %vm1752_vm13, 1.0, %v1220_v57 }
 0x493   : > { %v727_v14 = vpop.permute.xlu1 %726  ;;  %v880_v39 = vadd.f32 %v1042_v31, %v1041_v36  ;;  %v1044_v42 = vsel %vm1490_vm9, 1.0, %v1220_v57 }
 0x494   : > { %vm804_vm2 = vcmp.eq.f32.partialorder %v727_v14, %v1415_v16  ;;  %vm788_vm7 = vcmp.gt.f32.partialorder %v727_v14, %v1415_v16  ;;  %v1141_v14 = vpop.eup %1140 }
 0x495   : > { %475 = vxpose.xlu1.b32.cont [12/16] (narrow) %v459_v62, 8  ;;  %vm1484_vm8 = vmand %vm804_vm2, %vm692_vm1  ;;  %vm695_vm1 = vcmp.lt.s32.totalorder %v679_v17, %v1340_v44  ;;  %v881_v45 = vadd.f32 %v1043_v37, %v880_v39  ;;  %v440_v34 = vmul.f32 %v1141_v14, %v417_v21 }
 0x496   : > { %vm836_vm0 = vmor %vm788_vm7, %vm1484_vm8 }
 0x497   : > { %v1447_v15 = vpop.permute.xlu1 %731  ;;  %v1045_v49 = vsel %vm836_vm0, 1.0, %v1220_v57  ;;  %v882_v53 = vadd.f32 %v1044_v42, %v881_v45  ;;  %vm698_vm0 = vcmp.lt.s32.totalorder %v682_v47, %v1340_v44  ;;  %1142 = vlog2.f32 %v440_v34 }
 0x498   : > { %vm805_vm11 = vcmp.eq.f32.partialorder %v1447_v15, %v1415_v16  ;;  %vm789_vm14 = vcmp.gt.f32.partialorder %v1447_v15, %v1415_v16  ;;  %v404_v42 = vadd.f32 %v403_v35, %v402_v5 }
 0x499   : > { %476 = vxpose.xlu1.b32.cont [13/16] (narrow) %v460_v0, 8  ;;  %vm821_vm15 = vmand %vm805_vm11, %vm693_vm6  ;;  %v883_v62 = vadd.f32 %v1045_v49, %v882_v53  ;;  %v684_v0 = vadd.s32 96, %v1318_v11 }
 0x49a   : > { %vm1532_vm4 = vmor %vm789_vm14, %vm821_vm15 }
 0x49b   : > { %v1455_v6 = vpop.permute.xlu1 %736  ;;  %v1046_v56 = vsel %vm1532_vm4, 1.0, %v1220_v57  ;;  %vm699_vm4 = vcmp.lt.s32.totalorder %v683_v54, %v1340_v44 }
 0x49c   : > { %vm806_vm12 = vcmp.eq.f32.partialorder %v1455_v6, %v1415_v16  ;;  %vm790_vm11 = vcmp.gt.f32.partialorder %v1455_v6, %v1415_v16  ;;  %v884_v15 = vadd.f32 %v1046_v56, %v883_v62 }
 0x49d   : > { %477 = vxpose.xlu1.b32.cont [14/16] (narrow) %v461_v7, 8  ;;  %vm822_vm3 = vmand %vm806_vm12, %vm694_vm10  ;;  %vm697_vm10 = vcmp.lt.s32.totalorder %v681_v40, %v1340_v44  ;;  %v390_v7 = vrot.slane %v389_v48, 4 }
 0x49e   : > { %vm1554_vm9 = vmor %vm790_vm11, %vm822_vm3 }
 0x49f   : > { %v742_v25 = vpop.permute.xlu1 %741  ;;  %v1047_v8 = vsel %vm1554_vm9, 1.0, %v1220_v57  ;;  %vm700_vm9 = vcmp.lt.s32.totalorder %v684_v0, %v1340_v44  ;;  %v391_v18 = vadd.f32 %v390_v7, %v389_v48 }
 0x4a0   : > { %vm807_vm2 = vcmp.eq.f32.partialorder %v742_v25, %v1415_v16  ;;  %vm791_vm7 = vcmp.gt.f32.partialorder %v742_v25, %v1415_v16  ;;  %v885_v4 = vadd.f32 %v1047_v8, %v884_v15 }
 0x4a1   : > { %478 = vxpose.xlu1.b32.cont [15/16] (narrow) %v462_v9, 8  ;;  %vm1547_vm8 = vmand %vm807_vm2, %vm695_vm1  ;;  %v1143_v54 = vpop.eup %1142 }
 0x4a2   : > { %vm1578_vm15 = vmor %vm791_vm7, %vm1547_vm8  ;;  %v442_v0 = vmul.f32 0.6931472, %v1143_v54 }
 0x4a3   : > { %v747_v3 = vpop.permute.xlu1 %746  ;;  %v1048_v1 = vsel %vm1578_vm15, 1.0, %v1220_v57  ;;  %vm701_vm15 = vcmp.lt.s32.totalorder %v685_v19, %v1340_v44 }
 0x4a4   : > { %vm808_vm6 = vcmp.eq.f32.partialorder %v747_v3, %v1415_v16  ;;  %vm792_vm13 = vcmp.gt.f32.partialorder %v747_v3, %v1415_v16  ;;  %v886_v27 = vadd.f32 %v1048_v1, %v885_v4  ;;  %v392_v3 = vrot.slane %v391_v18, 2 }
 0x4a5   : > { %479 = vxpose.xlu1.b32.end [16/16] (narrow) %v463_v13, 8  ;;  %vm1570_vm14 = vmand %vm808_vm6, %vm696_vm5  ;;  %v427_v13 = vrot.slane %v426_v52, 1 }
 0x4a6   : > { %vm1603_vm3 = vmor %vm792_vm13, %vm1570_vm14  ;;  %v393_v45 = vadd.f32 %v392_v3, %v391_v18 }
 0x4a7   : > { %v1488_v32 = vpop.permute.xlu0 %751  ;;  %v1049_v23 = vsel %vm1603_vm3, 1.0, %v1220_v57  ;;  %v428_v25 = vadd.f32 %v427_v13, %v426_v52  ;;  %vm702_vm3 = vcmp.lt.s32.totalorder %v686_v22, %v1340_v44  ;;  %v443_v13 = vmul.f32 5.0, %v442_v0 }
 0x4a8   : > { %vm809_vm12 = vcmp.eq.f32.partialorder %v1488_v32, %v1415_v16  ;;  %vm793_vm2 = vcmp.gt.f32.partialorder %v1488_v32, %v1415_v16  ;;  %v431_v32 = vmul.f32 0.1, %v1323_v12  ;;  %v887_v33 = vadd.f32 %v1049_v23, %v886_v27 }
 0x4a9   : > { %vm1595_vm11 = vmand %vm809_vm12, %vm697_vm10  ;;  %v444_v37 = vmul.f32 %v1141_v14, %v428_v25  ;;  %v394_v50 = vrot.slane %v393_v45, 1  ;;  %v559_v5 = vrot.slane %v443_v13, 4 }
 0x4aa   : > { %vm841_vm8 = vmor %vm793_vm2, %vm1595_vm11  ;;  %v433_v41 = vrot.slane %v431_v32, 2 }
 0x4ab   : > { %v757_v51 = vpop.permute.xlu0 %756  ;;  %v1050_v17 = vsel %vm841_vm8, 1.0, %v1220_v57  ;;  %vm703_vm8 = vcmp.lt.s32.totalorder %v687_v29, %v1340_v44  ;;  %1144 = vlog2.f32 %v444_v37  ;;  %v405_v44 = vrot.slane %v404_v42, 1 }
 0x4ac   : > { %vm810_vm1 = vcmp.eq.f32.partialorder %v757_v51, %v1415_v16  ;;  %vm794_vm6 = vcmp.gt.f32.partialorder %v757_v51, %v1415_v16  ;;  %v888_v38 = vadd.f32 %v1050_v17, %v887_v33  ;;  %1146 = vrcp.f32 %v433_v41 }
 0x4ad   : > { %vm1618_vm7 = vmand %vm810_vm1, %vm698_vm0  ;;  %v406_v58 = vadd.f32 %v405_v44, %v404_v42  ;;  %v395_v55 = vadd.f32 %v394_v50, %v393_v45 }
 0x4ae   : > { %vm842_vm14 = vmor %vm794_vm6, %vm1618_vm7 }
 0x4af   : > { %v762_v60 = vpop.permute.xlu1 %761  ;;  %v1051_v36 = vsel %vm842_vm14, 1.0, %v1220_v57  ;;  %v429_v63 = vsub.f32 %v395_v55, %v1323_v12 }
 0x4b0   : > { %vm811_vm5 = vcmp.eq.f32.partialorder %v762_v60, %v1415_v16  ;;  %vm795_vm12 = vcmp.gt.f32.partialorder %v762_v60, %v1415_v16  ;;  %v889_v40 = vadd.f32 %v1051_v36, %v888_v38  ;;  %v437_v60 = vsub.f32 %v406_v58, %v1323_v12 }
 0x4b1   : > { %vm827_vm13 = vmand %vm811_vm5, %vm699_vm4  ;;  %v625_v38 = vmul.f32 %v1409_v28, %v1411_v30 }
 0x4b2   : > { %vm843_vm11 = vmor %vm795_vm12, %vm827_vm13 }
 0x4b3   : > { %v767_v10 = vpop.permute.xlu0 %766  ;;  %v1052_v39 = vsel %vm843_vm11, 1.0, %v1220_v57  ;;  %vm577_vm11 = vcmask 1040384  }
 0x4b4   : > { %vm812_vm10 = vcmp.eq.f32.partialorder %v767_v10, %v1415_v16  ;;  %vm796_vm1 = vcmp.gt.f32.partialorder %v767_v10, %v1415_v16  ;;  %v890_v46 = vadd.f32 %v1052_v39, %v889_v40  ;;  %v626_v40 = vsel %vm577_vm11, %v625_v38, 0.0 }
 0x4b5   : > { %vm1651_vm2 = vmand %vm812_vm10, %vm700_vm9  ;;  %v1145_v59 = vpop.eup %1144 }
 0x4b6   : > { %vm844_vm7 = vmor %vm796_vm1, %vm1651_vm2  ;;  %v1147_v61 = vpop.eup %1146  ;;  %v446_v7 = vmul.f32 0.6931472, %v1145_v59 }
 0x4b7   : > { %v772_v20 = vpop.permute.xlu1 %771  ;;  %v1053_v43 = vsel %vm844_vm7, 1.0, %v1220_v57  ;;  %v438_v8 = vmul.f32 %v1147_v61, %v437_v60  ;;  %v436_v10 = vmul.f32 %v1147_v61, %v429_v63 }
 0x4b8   : > { %vm813_vm0 = vcmp.eq.f32.partialorder %v772_v20, %v1415_v16  ;;  %vm797_vm5 = vcmp.gt.f32.partialorder %v772_v20, %v1415_v16  ;;  %v891_v48 = vadd.f32 %v1053_v43, %v890_v46  ;;  %v447_v14 = vmul.f32 5.0, %v446_v7 }
 0x4b9   : > { %vm829_vm6 = vmand %vm813_vm0, %vm701_vm15  ;;  %v550_v15 = vrot.slane %v438_v8, 4  ;;  %v545_v19 = vrot.slane %v436_v10, 4 }
 0x4ba   : > { %vm845_vm13 = vmor %vm797_vm5, %vm829_vm6  ;;  %v568_v1 = vrot.slane %v447_v14, 4  ;;  %vm923_vm5 = vcmp.eq.s32.totalorder %v1318_v11, 2  ;;  %vm927_vm6 = vcmp.eq.s32.totalorder %v1318_v11, 3 }
 0x4bb   : > { %v777_v24 = vpop.permute.xlu0 %776  ;;  %v1054_v47 = vsel %vm845_vm13, 1.0, %v1220_v57 }
 0x4bc   : > { %vm814_vm4 = vcmp.eq.f32.partialorder %v777_v24, %v1415_v16  ;;  %vm798_vm10 = vcmp.gt.f32.partialorder %v777_v24, %v1415_v16  ;;  %v892_v51 = vadd.f32 %v1054_v47, %v891_v48 }
 0x4bd   : > { %vm830_vm12 = vmand %vm814_vm4, %vm702_vm3  ;;  %vm916_vm3 = vcmp.eq.s32.totalorder %v1318_v11, 0  ;;  %vm919_vm4 = vcmp.eq.s32.totalorder %v1318_v11, 1 }
 0x4be   : > { %vm846_vm0 = vmor %vm798_vm10, %vm830_vm12 }
 0x4bf   : > { %v782_v26 = vpop.permute.xlu1 %781  ;;  %v1055_v49 = vsel %vm846_vm0, 1.0, %v1220_v57 }
 0x4c0   : > { %vm815_vm9 = vcmp.eq.f32.partialorder %v782_v26, %v1415_v16  ;;  %vm799_vm14 = vcmp.gt.f32.partialorder %v782_v26, %v1415_v16  ;;  %v893_v53 = vadd.f32 %v1055_v49, %v892_v51 }
 0x4c1   : > { %vm831_vm15 = vmand %vm815_vm9, %vm703_vm8 }
 0x4c2   : > { %vm847_vm1 = vmor %vm799_vm14, %vm831_vm15 }
 0x4c3   : > { %v1056_v52 = vsel %vm847_vm1, 1.0, %v1220_v57 }
 0x4c4   : > { %v894_v56 = vadd.f32 %v1056_v52, %v893_v53 }
 0x4c6   : > { %v895_v62 = vrot.slane %v894_v56, 4 }
 0x4c8   : > { %v896_v9 = vadd.f32 %v895_v62, %v894_v56 }
 0x4ca   : > { %v897_v2 = vrot.slane %v896_v9, 2 }
 0x4cc   : > { %v898_v18 = vadd.f32 %v897_v2, %v896_v9 }
 0x4ce   : > { %v899_v17 = vrot.slane %v898_v18, 1 }
 0x4d0   : > { %v900_v35 = vadd.f32 %v899_v17, %v898_v18 }
 0x4e8   : > { %v637_v29 = vpop.xlane.xlu0 %636 }
 0x4e9   : > { %v480_v6 = vpop.trf.xlu1  ;;  %v901_v32 = vmul.f32 3.0, %v637_v29 }
 0x4ea   : > { %v547_v20 = vsub.f32 %v480_v6, %v545_v19  ;;  %v552_v21 = vsub.f32 %v480_v6, %v550_v15  ;;  %v561_v4 = vsub.f32 %v480_v6, %v559_v5  ;;  %v570_v22 = vsub.f32 %v480_v6, %v568_v1 }
 0x4eb   : > { %vm902_vm2 = vcmp.lt.f32.partialorder %v900_v35, %v901_v32 }
 0x4ec   : > { %v553_v23 = vand.u32 2147483647, %v552_v21  ;;  %v562_v12 = vand.u32 2147483647, %v561_v4  ;;  %v548_v24 = vand.u32 2147483647, %v547_v20 }
 0x4ed   : > { %v571_v27 = vand.u32 2147483647, %v570_v22  ;;  %v1057_v39 = vsel %vm902_vm2, 1.0, %v1220_v57 }
 0x4ee   : > { %v555_v25 = vrot.slane %v553_v23, 1  ;;  %v564_v26 = vrot.slane %v562_v12, 2  ;;  %v905_v41 = vmul.f32 %v1057_v39, %v1415_v16 }
 0x4ef   : > { %v573_v33 = vrot.slane %v571_v27, 3 }
 0x4f0   : > { %v557_v31 = vadd.f32 %v555_v25, %v548_v24  ;;  %v906_v42 = vsel %vm577_vm11, %v905_v41, 0.0 }
 0x4f2   : > { %v566_v34 = vadd.f32 %v564_v26, %v557_v31 }
 0x4f4   : > { %v575_v36 = vadd.f32 %v573_v33, %v566_v34 }
 0x4f6   : > { %v576_v37 = vmul.f32 %v1409_v28, %v575_v36 }
 0x4f8   : > { %v578_v3 = vsel %vm577_vm11, %v576_v37, 0.0 }
 0x4f9   : > { %579 = vadd.xlane.f32.xlu0 %v578_v3 }
 0x4fd   : > { %627 = vadd.xlane.f32.xlu0 %v626_v40 }
 0x501   : > { %907 = vadd.xlane.f32.xlu0 %v906_v42 }
 0x586   : > { %v580_v43 = vpop.xlane.xlu0 %579 }
 0x587   : > { %v581_v45 = vrot.slane %v580_v43, 4 }
 0x589   : > { %v582_v46 = vadd.f32 %v581_v45, %v580_v43 }
 0x58a   : > { %v628_v47 = vpop.xlane.xlu0 %627 }
 0x58b   : > { %v583_v48 = vrot.slane %v582_v46, 2  ;;  %v629_v44 = vrot.slane %v628_v47, 4 }
 0x58d   : > { %v630_v49 = vadd.f32 %v629_v44, %v628_v47  ;;  %v584_v50 = vadd.f32 %v583_v48, %v582_v46 }
 0x58e   : > { %v908_v51 = vpop.xlane.xlu0 %907 }
 0x58f   : > { %v631_v52 = vrot.slane %v630_v49, 2  ;;  %v909_v28 = vrot.slane %v908_v51, 4  ;;  %v585_v30 = vrot.slane %v584_v50, 1 }
 0x591   : > { %v910_v57 = vadd.f32 %v909_v28, %v908_v51  ;;  %v586_v53 = vadd.f32 %v585_v30, %v584_v50  ;;  %v632_v58 = vadd.f32 %v631_v52, %v630_v49 }
 0x593   : > { %v911_v16 = vrot.slane %v910_v57, 2  ;;  %1064 = vpush %v586_v53  ;;  %v633_v54 = vrot.slane %v632_v58, 1 }
 0x595   : > { %v912_v55 = vadd.f32 %v911_v16, %v910_v57  ;;  %v634_v56 = vadd.f32 %v633_v54, %v632_v58 }
 0x597   : > { %1068 = vpush %v634_v56  ;;  %v913_v59 = vrot.slane %v912_v55, 1 }
 0x598   : > { %1070 = vpush %v637_v29 }
 0x599   : > { %v914_v60 = vadd.f32 %v913_v59, %v912_v55 }
 0x59b   : > { %1072 = vpush %v914_v60 }
 0x5c4   : > { %s1065_s27 = spop %1064 }
 0x5c5   : > { %v928_v8 = vstv %s1065_s27 }
 0x5c6   : > { %v929_v14 = vsel %vm927_vm6, %v928_v8, 0.0 }
 0x5c8   : > { %s1069_s29 = spop %1068 }
 0x5c9   : > { %s1071_s30 = spop %1070  ;;  %v917_v61 = vstv %s1069_s29 }
 0x5ca   : > { %v924_v62 = vstv %s1071_s30  ;;  %v918_v0 = vsel %vm916_vm3, %v917_v61, 0.0 }
 0x5cb   : > { %v925_v10 = vsel %vm923_vm5, %v924_v62, 0.0 }
 0x5cc   : > { %s1073_s6 = spop %1072 }
 0x5cd   : > { %v920_v63 = vstv %s1073_s6 }
 0x5ce   : > { %v921_v7 = vsel %vm919_vm4, %v920_v63, 0.0 }
 0x5cf   : > { %v922_v9 = vadd.f32 %v921_v7, %v918_v0 }
 0x5d1   : > { %v926_v13 = vadd.f32 %v925_v10, %v922_v9 }
 0x5d3   : > { %v930_v15 = vadd.f32 %v929_v14, %v926_v13 }
 0x5d5   : > { %931 = vst [vmem:[%s218_s8] sm:$0xff] %v930_v15 }
 0x5d6   : > { %1161 = shalt.err (!%p1158_p3)
}
 0x5d7   : > { %s1162_s23 = scalar_lea.hbm %s1697_s12, 128  ;;  %s1166_s29 = scalar_lea.hbm %s1743_s4, 256 }
 0x5d8   : > { %p1163_p4 = scmp.ne.s32.totalorder %s1697_s12, %s1162_s23  ;;  %p1167_p9 = scmp.lt.u32.totalorder %s1697_s12, %s1743_s4 }
 0x5d9   : > { %p1168_p10 = scmp.lt.u32.totalorder %s1166_s29, %s1162_s23  ;;  %p1170_p12 = scmp.lt.u32.totalorder %s1162_s23, %s1697_s12 }
 0x5da   : > { %p1164_p7 = pnand %p1163_p4, %p1285_p5 }
 0x5db   : > { %p1169_p11 = por %p1168_p10, %p1167_p9 }
 0x5dc   : > { %p1165_p8 = pneg %p1164_p7 }
 0x5dd   : > { %p1171_p13 = por %p1170_p12, %p1169_p11 }
 0x5df   : > { %p1172_p0 = pnand %p1171_p13, %p1165_p8 }
 0x5e1   : > { %1175 = shalt.err (!%p1172_p0)
}
 0x5e2   : > { %1074 = dma.vmem_to_hbm [thread:$0]  (%p1285_p5), %s1699_s9, 128, %s1697_s12, %s933_s13  }
 0x5e3 PF: > { %p1080_p1 = scmp.ge.s32.totalorder %s1210_s18, 2  ;;  %s958_s6 = sand.u32 1, %s1198_s15  }
 0x5e4   : > { %s959_s7 = scalar_lea.sflag [#allocation3], %s958_s6 }
 0x5e5   : > { %p1077_p2 = pnand %p1080_p1, %p1289_p6 }
 0x5e7   : > { %1193 = dma.done.wait (!%p1077_p2), %s959_s7, 128  }
 0x5e8   : > { %1195 = vsyncadd (!%p1077_p2), %s959_s7, 4294967168  ;;  %p14_p3 = scmp.ge.s32.totalorder %s1272_s21, 4   ;;  %s1771_s15 = smov %s1202_s16 }
 0x5e9   : > { %s1772_s16 = smov %s1206_s17  ;;  %s1773_s17 = smov %s1283_s24 }
 0x5ea   : > { %s1774_s18 = smov %s1272_s21  ;;  %16 = sbr.rel (!%p14_p3) target bundleno = 3 (0x3), region = 77 }
 0x5f1   :  { %964 = vsyncpa [#allocation3], 1 }
 0x5f2   :  { %966 = vsyncpa [#allocation3 + $0x1], 1 }

</bundles_post_ra>
